<compile_context>
chip_gen: v5e
topology: v5e:2x2
jax: 0.10.0
libtpu: 0.0.40
codegen_flags: <defaults>
</compile_context>

<pallas_src>
import functools

import jax
import jax.numpy as jnp
import numpy as np
from jax import lax
from jax.experimental import pallas as pl
from jax.experimental.pallas import tpu as pltpu


_PAD_L = 16   # interior column offset in the hidden scratch = bf16 sublane tile


# ------------------------------ fused kernel --------------------------------


def _fused_inv_residual_kernel(
    x_ref, w_e_ref, b1_ref, w_dw_ref, b2_ref, w_p_ref, b3_ref,
    o_ref, hid_ref, *, stride, th_o, has_expand, use_shortcut):
    """One grid step = th_o output rows of one batch element, fully fused.

    x_ref   : (1, H, W, Cin)  f32   full input image for this batch element
    w_e_ref : (Cin, Chid)     bf16  expand 1x1 weight (BN1 scale folded in)
    b1_ref  : (1, Chid)       f32   BN1 bias
    w_dw_ref: (3, 3, Chid)    f32   depthwise 3x3 weight (BN2 scale folded in)
    b2_ref  : (1, Chid)       f32   BN2 bias
    w_p_ref : (Chid, Cout)    bf16  project 1x1 weight (BN3 scale folded in)
    b3_ref  : (1, Cout)       f32   BN3 bias
    o_ref   : (1, th_o, Wo, Cout)   output row tile
    hid_ref : (th_in+2, L+W+2, Chid) bf16 scratch: hidden activation + halo,
              interior at columns [L, L+W).  VMEM only, never in HBM.
    """
    _, H, W, Cin = x_ref.shape
    Chid = hid_ref.shape[-1]
    _, _, Wo, Cout = o_ref.shape
    th_in = (th_o - 1) * stride + 3          # input rows needed incl. 1-row halo
    L = _PAD_L

    h_idx = pl.program_id(1)
    o0 = h_idx * th_o                        # first output row of this tile
    if (th_o & (th_o - 1)) == 0:
        o0 = pl.multiple_of(o0, th_o)
    r_in0 = o0 * stride - 1                  # first logical input row (top halo)
    r_clamp = jnp.clip(r_in0, 0, H - th_in)
    delta = r_in0 - r_clamp                  # -1 top edge, 0 interior, +1 bottom edge

    # ---- targeted halo zeroing (replaces the old full-scratch memset) -------
    # Left/right halo columns (read by the kw=0 / kw=2 taps at the image edge).
    # Two-column slabs at even offsets keep bf16 packed-sublane stores aligned.
    zpad = jnp.zeros((th_in + 2, 2, Chid), hid_ref.dtype)
    hid_ref[:, L - 2:L, :] = zpad                    # covers halo column L-1
    hid_ref[:, L + W:L + W + 2, :] = zpad            # covers halo column L+W

    zrow = jnp.zeros((1, W, Chid), hid_ref.dtype)

    @pl.when(delta < 0)        # top image edge: scratch row 1 is out-of-image halo
    def _():
        hid_ref[1:2, L:L + W, :] = zrow

    @pl.when(delta > 0)        # bottom image edge: scratch row th_in is the halo
    def _():
        hid_ref[th_in:th_in + 1, L:L + W, :] = zrow

    # ---- 1x1 expand conv + BN (scale folded into w_e) + ReLU ----------------
    # bf16 MXU operands, f32 accumulate; store hidden activation as bf16.
    xin = x_ref[0, pl.ds(r_clamp, th_in), :, :]              # (th_in, W, Cin) f32
    if has_expand:
        hid = jnp.dot(xin.reshape(th_in * W, Cin).astype(jnp.bfloat16),
                      w_e_ref[...], preferred_element_type=jnp.float32)
        hid = jnp.maximum(hid + b1_ref[...], 0.0)
        hid = hid.astype(hid_ref.dtype).reshape(th_in, W, Chid)
    else:
        hid = xin.astype(hid_ref.dtype)
    # scratch row s holds logical input row (r_in0 + s - 1); interior cols at +L
    hid_ref[pl.ds(1 - delta, th_in), L:L + W, :] = hid       # sublane-aligned store

    # ---- 3x3 depthwise conv + BN (scale folded) + ReLU, stride in-kernel ----
    # Taps are read straight from the ref (no full-scratch value, no spills);
    # accumulate in f32 (portable to v5e's f32-only VALU).
    acc = jnp.zeros((th_o, Wo, Chid), jnp.float32)
    for kh in range(3):
        for kw in range(3):
            if stride == 1:
                tap = hid_ref[pl.ds(1 + kh, th_o), pl.ds(L - 1 + kw, Wo), :]
            else:
                tap = hid_ref[pl.ds(1 + kh, th_o, stride=stride),
                              pl.ds(L - 1 + kw, Wo, stride=stride), :]
            acc = acc + tap.astype(jnp.float32) * w_dw_ref[kh, kw, :]
    y = jnp.maximum(acc + b2_ref[...], 0.0)                  # (th_o, Wo, Chid) f32

    # ---- 1x1 project conv + BN (scale folded, no ReLU) [+ residual] ---------
    out = jnp.dot(y.reshape(th_o * Wo, Chid).astype(jnp.bfloat16),
                  w_p_ref[...], preferred_element_type=jnp.float32) + b3_ref[...]
    if use_shortcut:
        # stride == 1 and Cin == Cout: residual rows come straight from the
        # VMEM-resident input image (no extra HBM read), added in f32.
        res = x_ref[0, pl.ds(o0, th_o), :, :].astype(jnp.float32)
        out = out + res.reshape(th_o * Wo, Cout)
    # NOTE: at small Cout this store is lane-masked; a lane-dense folded out
    # block would need an (M*Wo,Cout)->(M,Wo*Cout) in-kernel relayout (deferred).
    o_ref[0] = out.reshape(th_o, Wo, Cout).astype(o_ref.dtype)


# ------------------------------ module wrapper -------------------------------


def _fold_bn(gamma, beta, mean, var, eps=1e-5):
    scale = gamma / jnp.sqrt(var + eps)
    bias = beta - mean * scale
    return scale, bias


def _choose_row_tile(Ho, H, W, stride, Chid, scratch_budget=8 << 20):
    """Largest divisor of Ho (halo'd window <= H rows) close to a target that
    fills the MXU M dim (th_o*Wo >= 256) while keeping the bf16 hidden scratch
    under a VMEM budget."""
    Wo = (W - 1) // stride + 1
    target = max(8, (256 + Wo - 1) // Wo)

    def scratch_bytes(th):
        return ((th - 1) * stride + 5) * (_PAD_L + W + 2) * Chid * 2

    while target > 1 and scratch_bytes(target) > scratch_budget:
        target -= 1
    for th in range(min(target, Ho), 0, -1):
        if Ho % th == 0 and (th - 1) * stride + 3 <= H:
            return th
    raise ValueError(f"no valid row tile for Ho={Ho}, H={H}, stride={stride}")


def inver_residual_forward_nhwc(x, params, *, stride, expand_rate,
                                in_channel, out_channel):
    """NHWC core.  Keep NHWC end-to-end when chaining blocks in a network."""
    use_shortcut = (stride == 1) and (in_channel == out_channel)
    has_expand = expand_rate != 1

    N, H, W, Cin = x.shape
    Ho = (H - 1) // stride + 1
    Wo = (W - 1) // stride + 1

    # Fold BN scales into the conv weights once; matmul weights go to bf16.
    if has_expand:
        s1, b1 = _fold_bn(*params["bn1"])
        w_e = (params["w_expand"] * s1[None, :]).astype(jnp.bfloat16)
    else:
        w_e = jnp.zeros((1, 1), jnp.bfloat16)            # unused dummy
        b1 = jnp.zeros((1,), jnp.float32)
    s2, b2 = _fold_bn(*params["bn2"])
    w_dw = params["w_dw"] * s2[None, None, :]            # f32 (VPU path, v5e-safe)
    s3, b3 = _fold_bn(*params["bn3"])
    w_p = (params["w_proj"] * s3[None, :]).astype(jnp.bfloat16)

    Chid = w_dw.shape[-1]
    Cout = params["w_proj"].shape[-1]
    b1_2d, b2_2d, b3_2d = b1.reshape(1, -1), b2.reshape(1, -1), b3.reshape(1, -1)

    th_o = _choose_row_tile(Ho, H, W, stride, Chid)      # output rows per grid step
    th_in = (th_o - 1) * stride + 3
    CW = _PAD_L + W + 2                                  # scratch columns (halo + align)

    # Explicit VMEM budget: double-buffered input image + output tile + weights
    # + the bf16 hidden scratch.  Capped at v7x's 64 MiB physical VMEM per TC.
    isz = x.dtype.itemsize
    need = (2 * H * W * Cin * isz
            + 2 * th_o * Wo * Cout * isz
            + (th_in + 2) * CW * Chid * 2
            + 2 * (2 * w_e.size + 2 * w_p.size + 4 * w_dw.size
                   + 4 * (b1_2d.size + b2_2d.size + b3_2d.size)))
    vmem_limit = int(min(max(2 * need, 16 << 20), 64 << 20))

    kernel = functools.partial(
        _fused_inv_residual_kernel, stride=stride, th_o=th_o,
        has_expand=has_expand, use_shortcut=use_shortcut)

    return pl.pallas_call(
        kernel,
        out_shape=jax.ShapeDtypeStruct((N, Ho, Wo, Cout), x.dtype),
        grid=(N, Ho // th_o),
        in_specs=[
            # Full image per batch element; block index constant along the
            # row-tile axis so it is DMA'd once per batch element, not per tile.
            pl.BlockSpec((1, H, W, Cin), lambda n, h: (n, 0, 0, 0)),
            pl.BlockSpec(w_e.shape, lambda n, h: (0, 0)),
            pl.BlockSpec(b1_2d.shape, lambda n, h: (0, 0)),
            pl.BlockSpec(w_dw.shape, lambda n, h: (0, 0, 0)),
            pl.BlockSpec(b2_2d.shape, lambda n, h: (0, 0)),
            pl.BlockSpec(w_p.shape, lambda n, h: (0, 0)),
            pl.BlockSpec(b3_2d.shape, lambda n, h: (0, 0)),
        ],
        out_specs=pl.BlockSpec((1, th_o, Wo, Cout), lambda n, h: (n, h, 0, 0)),
        scratch_shapes=[pltpu.VMEM((th_in + 2, CW, Chid), jnp.bfloat16)],
        compiler_params=pltpu.CompilerParams(
            dimension_semantics=("parallel", "parallel"),
            vmem_limit_bytes=vmem_limit),
    )(x, w_e, b1_2d, w_dw, b2_2d, w_p, b3_2d)


def inver_residual_forward(x_nchw, params, *, stride, expand_rate,
                           in_channel, out_channel):
    # Boundary transposes only (to match the PyTorch NCHW interface).  In a
    # real network keep NHWC end-to-end and call inver_residual_forward_nhwc
    # directly: each transpose here is a full extra HBM round trip.
    x = jnp.transpose(x_nchw, (0, 2, 3, 1))              # NCHW -> NHWC
    y = inver_residual_forward_nhwc(
        x, params, stride=stride, expand_rate=expand_rate,
        in_channel=in_channel, out_channel=out_channel)
    return jnp.transpose(y, (0, 3, 1, 2))                # NHWC -> NCHW


# ------------------------------ parameter init -------------------------------


def init_params(key, in_channel, out_channel, expand_rate):
    hidden = in_channel * expand_rate
    ks = jax.random.split(key, 12)

    def bn(k, c):
        k0, k1, k2, k3 = jax.random.split(k, 4)
        gamma = 1.0 + 0.1 * jax.random.normal(k0, (c,), jnp.float32)
        beta = 0.1 * jax.random.normal(k1, (c,), jnp.float32)
        mean = 0.1 * jax.random.normal(k2, (c,), jnp.float32)
        var = jnp.abs(jax.random.normal(k3, (c,), jnp.float32)) + 0.5
        return gamma, beta, mean, var

    p = {}
    if expand_rate != 1:
        p["w_expand"] = 0.1 * jax.random.normal(ks[0], (in_channel, hidden), jnp.float32)
        p["bn1"] = bn(ks[1], hidden)
    p["w_dw"] = 0.1 * jax.random.normal(ks[2], (3, 3, hidden), jnp.float32)
    p["bn2"] = bn(ks[3], hidden)
    p["w_proj"] = 0.1 * jax.random.normal(ks[4], (hidden, out_channel), jnp.float32)
    p["bn3"] = bn(ks[5], out_channel)
    return p


# ------------------------------ pure-JAX reference ---------------------------


def _reference_forward(x_nchw, params, *, stride, expand_rate,
                       in_channel, out_channel):
    use_shortcut = (stride == 1) and (in_channel == out_channel)
    x = jnp.transpose(x_nchw, (0, 2, 3, 1))
    h = x
    if expand_rate != 1:
        s1, b1 = _fold_bn(*params["bn1"])
        h = jnp.einsum("nhwc,cd->nhwd", h, params["w_expand"]) * s1 + b1
        h = jnp.maximum(h, 0.0)
    C = h.shape[-1]
    s2, b2 = _fold_bn(*params["bn2"])
    h = lax.conv_general_dilated(
        h, params["w_dw"].reshape(3, 3, 1, C),
        window_strides=(stride, stride), padding=((1, 1), (1, 1)),
        feature_group_count=C,
        dimension_numbers=("NHWC", "HWIO", "NHWC"))
    h = jnp.maximum(h * s2 + b2, 0.0)
    s3, b3 = _fold_bn(*params["bn3"])
    y = jnp.einsum("nhwc,cd->nhwd", h, params["w_proj"]) * s3 + b3
    if use_shortcut:
        y = y + x
    return jnp.transpose(y, (0, 3, 1, 2))


# ----------------------------------- main ------------------------------------


if __name__ == "__main__":
    in_channel, out_channel, stride, expand_rate = 8, 8, 1, 4
    N, H, W = 2, 16, 16

    key = jax.random.PRNGKey(0)
    kx, kp = jax.random.split(key)
    x = jax.random.normal(kx, (N, in_channel, H, W), jnp.float32)  # NCHW, like PyTorch
    params = init_params(kp, in_channel, out_channel, expand_rate)

    out = inver_residual_forward(
        x, params, stride=stride, expand_rate=expand_rate,
        in_channel=in_channel, out_channel=out_channel)
    out = jax.block_until_ready(out)

    ref = _reference_forward(
        x, params, stride=stride, expand_rate=expand_rate,
        in_channel=in_channel, out_channel=out_channel)
    # Tolerance reflects bf16 MXU operands / bf16 hidden scratch vs f32 reference.
    np.testing.assert_allclose(np.asarray(out), np.asarray(ref), rtol=2e-2, atol=2e-2)

    print("KERNEL_OK")
</pallas_src>

<mosaic_0001>
module attributes {stable_mosaic.version = 11 : i64} {
  func.func @_fused_inv_residual_kernel(%arg0: i32, %arg1: i32, %arg2: memref<1x16x16x8xf32, #tpu.memory_space<vmem>>, %arg3: memref<8x32xbf16, #tpu.memory_space<vmem>>, %arg4: memref<1x32xf32, #tpu.memory_space<vmem>>, %arg5: memref<3x3x32xf32, #tpu.memory_space<vmem>>, %arg6: memref<1x32xf32, #tpu.memory_space<vmem>>, %arg7: memref<32x8xbf16, #tpu.memory_space<vmem>>, %arg8: memref<1x8xf32, #tpu.memory_space<vmem>>, %arg9: memref<1x8x16x8xf32, #tpu.memory_space<vmem>>, %arg10: memref<12x34x32xbf16, #tpu.memory_space<vmem>>) attributes {dimension_semantics = [#tpu.dimension_semantics<parallel>, #tpu.dimension_semantics<parallel>], iteration_bounds = array<i64: 2, 2>, scalar_prefetch = 0 : i64, scratch_operands = 1 : i64, tpu.core_type = #tpu.core_type<tc>, window_params = [{transform_indices = @transform_0, window_bounds = array<i64: 1, 16, 16, 8>}, {pipeline_mode = #tpu.pipeline_mode<synchronous>, transform_indices = @transform_1, window_bounds = array<i64: 8, 32>}, {pipeline_mode = #tpu.pipeline_mode<synchronous>, transform_indices = @transform_2, window_bounds = array<i64: 1, 32>}, {pipeline_mode = #tpu.pipeline_mode<synchronous>, transform_indices = @transform_3, window_bounds = array<i64: 3, 3, 32>}, {pipeline_mode = #tpu.pipeline_mode<synchronous>, transform_indices = @transform_4, window_bounds = array<i64: 1, 32>}, {pipeline_mode = #tpu.pipeline_mode<synchronous>, transform_indices = @transform_5, window_bounds = array<i64: 32, 8>}, {pipeline_mode = #tpu.pipeline_mode<synchronous>, transform_indices = @transform_6, window_bounds = array<i64: 1, 8>}, {transform_indices = @transform_7, window_bounds = array<i64: 1, 8, 16, 8>}]} {
    %c8_i32 = arith.constant 8 : i32
    %0 = arith.muli %arg1, %c8_i32 : i32
    %1 = tpu.assume_multiple %0, 8 : i32
    %c1_i32 = arith.constant 1 : i32
    %2 = arith.muli %1, %c1_i32 : i32
    %c1_i32_0 = arith.constant 1 : i32
    %3 = arith.subi %2, %c1_i32_0 : i32
    %c0_i32 = arith.constant 0 : i32
    %c6_i32 = arith.constant 6 : i32
    %4 = arith.maxsi %c0_i32, %3 : i32
    %5 = arith.minsi %c6_i32, %4 : i32
    %6 = arith.subi %3, %5 : i32
    %cst = arith.constant 0.000000e+00 : bf16
    %7 = vector.broadcast %cst : bf16 to vector<12x2x32xbf16>
    %c0 = arith.constant 0 : index
    %c14 = arith.constant 14 : index
    %c0_1 = arith.constant 0 : index
    %8 = vector.load %arg10[%c0, %c14, %c0_1] : memref<12x34x32xbf16, #tpu.memory_space<vmem>>, vector<12x2x32xbf16>
    tpu.vector_store %arg10[%c0, %c14, %c0_1], %7 {strides = array<i32>} : memref<12x34x32xbf16, #tpu.memory_space<vmem>>, vector<12x2x32xbf16>,
    %c0_2 = arith.constant 0 : index
    %c32 = arith.constant 32 : index
    %c0_3 = arith.constant 0 : index
    %9 = vector.load %arg10[%c0_2, %c32, %c0_3] : memref<12x34x32xbf16, #tpu.memory_space<vmem>>, vector<12x2x32xbf16>
    tpu.vector_store %arg10[%c0_2, %c32, %c0_3], %7 {strides = array<i32>} : memref<12x34x32xbf16, #tpu.memory_space<vmem>>, vector<12x2x32xbf16>,
    %cst_4 = arith.constant 0.000000e+00 : bf16
    %10 = vector.broadcast %cst_4 : bf16 to vector<1x16x32xbf16>
    %c0_i32_5 = arith.constant 0 : i32
    %11 = arith.cmpi slt, %6, %c0_i32_5 : i32
    %12 = arith.extui %11 : i1 to i32
    %c0_i32_6 = arith.constant 0 : i32
    %13 = arith.cmpi ne, %12, %c0_i32_6 : i32
    scf.if %13 {
      %c1_85 = arith.constant 1 : index
      %c16_86 = arith.constant 16 : index
      %c0_87 = arith.constant 0 : index
      %129 = vector.load %arg10[%c1_85, %c16_86, %c0_87] : memref<12x34x32xbf16, #tpu.memory_space<vmem>>, vector<1x16x32xbf16>
      tpu.vector_store %arg10[%c1_85, %c16_86, %c0_87], %10 {strides = array<i32>} : memref<12x34x32xbf16, #tpu.memory_space<vmem>>, vector<1x16x32xbf16>,
    } else {
    }
    %c0_i32_7 = arith.constant 0 : i32
    %14 = arith.cmpi sgt, %6, %c0_i32_7 : i32
    %15 = arith.extui %14 : i1 to i32
    %c0_i32_8 = arith.constant 0 : i32
    %16 = arith.cmpi ne, %15, %c0_i32_8 : i32
    scf.if %16 {
      %c10 = arith.constant 10 : index
      %c16_85 = arith.constant 16 : index
      %c0_86 = arith.constant 0 : index
      %129 = vector.load %arg10[%c10, %c16_85, %c0_86] : memref<12x34x32xbf16, #tpu.memory_space<vmem>>, vector<1x16x32xbf16>
      tpu.vector_store %arg10[%c10, %c16_85, %c0_86], %10 {strides = array<i32>} : memref<12x34x32xbf16, #tpu.memory_space<vmem>>, vector<1x16x32xbf16>,
    } else {
    }
    %c0_9 = arith.constant 0 : index
    %17 = arith.index_cast %5 : i32 to index
    %c0_10 = arith.constant 0 : index
    %c0_11 = arith.constant 0 : index
    %18 = vector.load %arg2[%c0_9, %17, %c0_10, %c0_11] : memref<1x16x16x8xf32, #tpu.memory_space<vmem>>, vector<1x10x16x8xf32>
    %19 = vector.shape_cast %18 : vector<1x10x16x8xf32> to vector<10x16x8xf32>
    %20 = vector.shape_cast %19 : vector<10x16x8xf32> to vector<160x8xf32>
    %21 = arith.truncf %20 : vector<160x8xf32> to vector<160x8xbf16>
    %c0_12 = arith.constant 0 : index
    %c0_13 = arith.constant 0 : index
    %22 = vector.load %arg3[%c0_12, %c0_13] : memref<8x32xbf16, #tpu.memory_space<vmem>>, vector<8x32xbf16>
    %cst_14 = arith.constant dense<0.000000e+00> : vector<160x32xf32>
    %23 = tpu.matmul %21, %22, %cst_14 {dimension_numbers = #tpu.dot_dimension_numbers<[1], [0], [0], [1], [0, 0, 1, 1], [], []>} : vector<160x8xbf16>, vector<8x32xbf16>, vector<160x32xf32> -> vector<160x32xf32>
    %c0_15 = arith.constant 0 : index
    %c0_16 = arith.constant 0 : index
    %24 = vector.load %arg4[%c0_15, %c0_16] : memref<1x32xf32, #tpu.memory_space<vmem>>, vector<1x32xf32>
    %25 = vector.broadcast %24 : vector<1x32xf32> to vector<160x32xf32>
    %26 = arith.addf %23, %25 : vector<160x32xf32>
    %cst_17 = arith.constant 0.000000e+00 : f32
    %27 = vector.broadcast %cst_17 : f32 to vector<160x32xf32>
    %28 = arith.maximumf %26, %27 : vector<160x32xf32>
    %29 = arith.truncf %28 : vector<160x32xf32> to vector<160x32xbf16>
    %30 = vector.shape_cast %29 : vector<160x32xbf16> to vector<10x16x32xbf16>
    %c1_i32_18 = arith.constant 1 : i32
    %31 = arith.subi %c1_i32_18, %6 : i32
    %32 = arith.index_cast %31 : i32 to index
    %c16 = arith.constant 16 : index
    %c0_19 = arith.constant 0 : index
    %33 = vector.load %arg10[%32, %c16, %c0_19] : memref<12x34x32xbf16, #tpu.memory_space<vmem>>, vector<10x16x32xbf16>
    tpu.vector_store %arg10[%32, %c16, %c0_19], %30 {strides = array<i32>} : memref<12x34x32xbf16, #tpu.memory_space<vmem>>, vector<10x16x32xbf16>,
    %cst_20 = arith.constant 0.000000e+00 : f32
    %34 = vector.broadcast %cst_20 : f32 to vector<8x16x32xf32>
    %c1 = arith.constant 1 : index
    %c15 = arith.constant 15 : index
    %c0_21 = arith.constant 0 : index
    %35 = vector.load %arg10[%c1, %c15, %c0_21] : memref<12x34x32xbf16, #tpu.memory_space<vmem>>, vector<8x16x32xbf16>
    %36 = arith.extf %35 : vector<8x16x32xbf16> to vector<8x16x32xf32>
    %c0_22 = arith.constant 0 : index
    %c0_23 = arith.constant 0 : index
    %c0_24 = arith.constant 0 : index
    %37 = vector.load %arg5[%c0_22, %c0_23, %c0_24] : memref<3x3x32xf32, #tpu.memory_space<vmem>>, vector<1x1x32xf32>
    %38 = vector.shape_cast %37 : vector<1x1x32xf32> to vector<32xf32>
    %39 = vector.shape_cast %38 : vector<32xf32> to vector<1x1x32xf32>
    %40 = vector.broadcast %39 : vector<1x1x32xf32> to vector<8x16x32xf32>
    %41 = arith.mulf %36, %40 : vector<8x16x32xf32>
    %42 = arith.addf %34, %41 : vector<8x16x32xf32>
    %c1_25 = arith.constant 1 : index
    %c16_26 = arith.constant 16 : index
    %c0_27 = arith.constant 0 : index
    %43 = vector.load %arg10[%c1_25, %c16_26, %c0_27] : memref<12x34x32xbf16, #tpu.memory_space<vmem>>, vector<8x16x32xbf16>
    %44 = arith.extf %43 : vector<8x16x32xbf16> to vector<8x16x32xf32>
    %c0_28 = arith.constant 0 : index
    %c1_29 = arith.constant 1 : index
    %c0_30 = arith.constant 0 : index
    %45 = vector.load %arg5[%c0_28, %c1_29, %c0_30] : memref<3x3x32xf32, #tpu.memory_space<vmem>>, vector<1x1x32xf32>
    %46 = vector.shape_cast %45 : vector<1x1x32xf32> to vector<32xf32>
    %47 = vector.shape_cast %46 : vector<32xf32> to vector<1x1x32xf32>
    %48 = vector.broadcast %47 : vector<1x1x32xf32> to vector<8x16x32xf32>
    %49 = arith.mulf %44, %48 : vector<8x16x32xf32>
    %50 = arith.addf %42, %49 : vector<8x16x32xf32>
    %c1_31 = arith.constant 1 : index
    %c17 = arith.constant 17 : index
    %c0_32 = arith.constant 0 : index
    %51 = vector.load %arg10[%c1_31, %c17, %c0_32] : memref<12x34x32xbf16, #tpu.memory_space<vmem>>, vector<8x16x32xbf16>
    %52 = arith.extf %51 : vector<8x16x32xbf16> to vector<8x16x32xf32>
    %c0_33 = arith.constant 0 : index
    %c2 = arith.constant 2 : index
    %c0_34 = arith.constant 0 : index
    %53 = vector.load %arg5[%c0_33, %c2, %c0_34] : memref<3x3x32xf32, #tpu.memory_space<vmem>>, vector<1x1x32xf32>
    %54 = vector.shape_cast %53 : vector<1x1x32xf32> to vector<32xf32>
    %55 = vector.shape_cast %54 : vector<32xf32> to vector<1x1x32xf32>
    %56 = vector.broadcast %55 : vector<1x1x32xf32> to vector<8x16x32xf32>
    %57 = arith.mulf %52, %56 : vector<8x16x32xf32>
    %58 = arith.addf %50, %57 : vector<8x16x32xf32>
    %c2_35 = arith.constant 2 : index
    %c15_36 = arith.constant 15 : index
    %c0_37 = arith.constant 0 : index
    %59 = vector.load %arg10[%c2_35, %c15_36, %c0_37] : memref<12x34x32xbf16, #tpu.memory_space<vmem>>, vector<8x16x32xbf16>
    %60 = arith.extf %59 : vector<8x16x32xbf16> to vector<8x16x32xf32>
    %c1_38 = arith.constant 1 : index
    %c0_39 = arith.constant 0 : index
    %c0_40 = arith.constant 0 : index
    %61 = vector.load %arg5[%c1_38, %c0_39, %c0_40] : memref<3x3x32xf32, #tpu.memory_space<vmem>>, vector<1x1x32xf32>
    %62 = vector.shape_cast %61 : vector<1x1x32xf32> to vector<32xf32>
    %63 = vector.shape_cast %62 : vector<32xf32> to vector<1x1x32xf32>
    %64 = vector.broadcast %63 : vector<1x1x32xf32> to vector<8x16x32xf32>
    %65 = arith.mulf %60, %64 : vector<8x16x32xf32>
    %66 = arith.addf %58, %65 : vector<8x16x32xf32>
    %c2_41 = arith.constant 2 : index
    %c16_42 = arith.constant 16 : index
    %c0_43 = arith.constant 0 : index
    %67 = vector.load %arg10[%c2_41, %c16_42, %c0_43] : memref<12x34x32xbf16, #tpu.memory_space<vmem>>, vector<8x16x32xbf16>
    %68 = arith.extf %67 : vector<8x16x32xbf16> to vector<8x16x32xf32>
    %c1_44 = arith.constant 1 : index
    %c1_45 = arith.constant 1 : index
    %c0_46 = arith.constant 0 : index
    %69 = vector.load %arg5[%c1_44, %c1_45, %c0_46] : memref<3x3x32xf32, #tpu.memory_space<vmem>>, vector<1x1x32xf32>
    %70 = vector.shape_cast %69 : vector<1x1x32xf32> to vector<32xf32>
    %71 = vector.shape_cast %70 : vector<32xf32> to vector<1x1x32xf32>
    %72 = vector.broadcast %71 : vector<1x1x32xf32> to vector<8x16x32xf32>
    %73 = arith.mulf %68, %72 : vector<8x16x32xf32>
    %74 = arith.addf %66, %73 : vector<8x16x32xf32>
    %c2_47 = arith.constant 2 : index
    %c17_48 = arith.constant 17 : index
    %c0_49 = arith.constant 0 : index
    %75 = vector.load %arg10[%c2_47, %c17_48, %c0_49] : memref<12x34x32xbf16, #tpu.memory_space<vmem>>, vector<8x16x32xbf16>
    %76 = arith.extf %75 : vector<8x16x32xbf16> to vector<8x16x32xf32>
    %c1_50 = arith.constant 1 : index
    %c2_51 = arith.constant 2 : index
    %c0_52 = arith.constant 0 : index
    %77 = vector.load %arg5[%c1_50, %c2_51, %c0_52] : memref<3x3x32xf32, #tpu.memory_space<vmem>>, vector<1x1x32xf32>
    %78 = vector.shape_cast %77 : vector<1x1x32xf32> to vector<32xf32>
    %79 = vector.shape_cast %78 : vector<32xf32> to vector<1x1x32xf32>
    %80 = vector.broadcast %79 : vector<1x1x32xf32> to vector<8x16x32xf32>
    %81 = arith.mulf %76, %80 : vector<8x16x32xf32>
    %82 = arith.addf %74, %81 : vector<8x16x32xf32>
    %c3 = arith.constant 3 : index
    %c15_53 = arith.constant 15 : index
    %c0_54 = arith.constant 0 : index
    %83 = vector.load %arg10[%c3, %c15_53, %c0_54] : memref<12x34x32xbf16, #tpu.memory_space<vmem>>, vector<8x16x32xbf16>
    %84 = arith.extf %83 : vector<8x16x32xbf16> to vector<8x16x32xf32>
    %c2_55 = arith.constant 2 : index
    %c0_56 = arith.constant 0 : index
    %c0_57 = arith.constant 0 : index
    %85 = vector.load %arg5[%c2_55, %c0_56, %c0_57] : memref<3x3x32xf32, #tpu.memory_space<vmem>>, vector<1x1x32xf32>
    %86 = vector.shape_cast %85 : vector<1x1x32xf32> to vector<32xf32>
    %87 = vector.shape_cast %86 : vector<32xf32> to vector<1x1x32xf32>
    %88 = vector.broadcast %87 : vector<1x1x32xf32> to vector<8x16x32xf32>
    %89 = arith.mulf %84, %88 : vector<8x16x32xf32>
    %90 = arith.addf %82, %89 : vector<8x16x32xf32>
    %c3_58 = arith.constant 3 : index
    %c16_59 = arith.constant 16 : index
    %c0_60 = arith.constant 0 : index
    %91 = vector.load %arg10[%c3_58, %c16_59, %c0_60] : memref<12x34x32xbf16, #tpu.memory_space<vmem>>, vector<8x16x32xbf16>
    %92 = arith.extf %91 : vector<8x16x32xbf16> to vector<8x16x32xf32>
    %c2_61 = arith.constant 2 : index
    %c1_62 = arith.constant 1 : index
    %c0_63 = arith.constant 0 : index
    %93 = vector.load %arg5[%c2_61, %c1_62, %c0_63] : memref<3x3x32xf32, #tpu.memory_space<vmem>>, vector<1x1x32xf32>
    %94 = vector.shape_cast %93 : vector<1x1x32xf32> to vector<32xf32>
    %95 = vector.shape_cast %94 : vector<32xf32> to vector<1x1x32xf32>
    %96 = vector.broadcast %95 : vector<1x1x32xf32> to vector<8x16x32xf32>
    %97 = arith.mulf %92, %96 : vector<8x16x32xf32>
    %98 = arith.addf %90, %97 : vector<8x16x32xf32>
    %c3_64 = arith.constant 3 : index
    %c17_65 = arith.constant 17 : index
    %c0_66 = arith.constant 0 : index
    %99 = vector.load %arg10[%c3_64, %c17_65, %c0_66] : memref<12x34x32xbf16, #tpu.memory_space<vmem>>, vector<8x16x32xbf16>
    %100 = arith.extf %99 : vector<8x16x32xbf16> to vector<8x16x32xf32>
    %c2_67 = arith.constant 2 : index
    %c2_68 = arith.constant 2 : index
    %c0_69 = arith.constant 0 : index
    %101 = vector.load %arg5[%c2_67, %c2_68, %c0_69] : memref<3x3x32xf32, #tpu.memory_space<vmem>>, vector<1x1x32xf32>
    %102 = vector.shape_cast %101 : vector<1x1x32xf32> to vector<32xf32>
    %103 = vector.shape_cast %102 : vector<32xf32> to vector<1x1x32xf32>
    %104 = vector.broadcast %103 : vector<1x1x32xf32> to vector<8x16x32xf32>
    %105 = arith.mulf %100, %104 : vector<8x16x32xf32>
    %106 = arith.addf %98, %105 : vector<8x16x32xf32>
    %c0_70 = arith.constant 0 : index
    %c0_71 = arith.constant 0 : index
    %107 = vector.load %arg6[%c0_70, %c0_71] : memref<1x32xf32, #tpu.memory_space<vmem>>, vector<1x32xf32>
    %108 = vector.shape_cast %107 : vector<1x32xf32> to vector<1x1x32xf32>
    %109 = vector.broadcast %108 : vector<1x1x32xf32> to vector<8x16x32xf32>
    %110 = arith.addf %106, %109 : vector<8x16x32xf32>
    %cst_72 = arith.constant 0.000000e+00 : f32
    %111 = vector.broadcast %cst_72 : f32 to vector<8x16x32xf32>
    %112 = arith.maximumf %110, %111 : vector<8x16x32xf32>
    %113 = vector.shape_cast %112 : vector<8x16x32xf32> to vector<128x32xf32>
    %114 = arith.truncf %113 : vector<128x32xf32> to vector<128x32xbf16>
    %c0_73 = arith.constant 0 : index
    %c0_74 = arith.constant 0 : index
    %115 = vector.load %arg7[%c0_73, %c0_74] : memref<32x8xbf16, #tpu.memory_space<vmem>>, vector<32x8xbf16>
    %cst_75 = arith.constant dense<0.000000e+00> : vector<128x8xf32>
    %116 = tpu.matmul %114, %115, %cst_75 {dimension_numbers = #tpu.dot_dimension_numbers<[1], [0], [0], [1], [0, 0, 1, 1], [], []>} : vector<128x32xbf16>, vector<32x8xbf16>, vector<128x8xf32> -> vector<128x8xf32>
    %c0_76 = arith.constant 0 : index
    %c0_77 = arith.constant 0 : index
    %117 = vector.load %arg8[%c0_76, %c0_77] : memref<1x8xf32, #tpu.memory_space<vmem>>, vector<1x8xf32>
    %118 = vector.broadcast %117 : vector<1x8xf32> to vector<128x8xf32>
    %119 = arith.addf %116, %118 : vector<128x8xf32>
    %c0_78 = arith.constant 0 : index
    %120 = arith.index_cast %1 : i32 to index
    %c0_79 = arith.constant 0 : index
    %c0_80 = arith.constant 0 : index
    %121 = vector.load %arg2[%c0_78, %120, %c0_79, %c0_80] : memref<1x16x16x8xf32, #tpu.memory_space<vmem>>, vector<1x8x16x8xf32>
    %122 = vector.shape_cast %121 : vector<1x8x16x8xf32> to vector<8x16x8xf32>
    %123 = vector.shape_cast %122 : vector<8x16x8xf32> to vector<128x8xf32>
    %124 = arith.addf %119, %123 : vector<128x8xf32>
    %125 = vector.shape_cast %124 : vector<128x8xf32> to vector<8x16x8xf32>
    %c0_81 = arith.constant 0 : index
    %c0_82 = arith.constant 0 : index
    %c0_83 = arith.constant 0 : index
    %c0_84 = arith.constant 0 : index
    %126 = vector.load %arg9[%c0_81, %c0_82, %c0_83, %c0_84] : memref<1x8x16x8xf32, #tpu.memory_space<vmem>>, vector<1x8x16x8xf32>
    %127 = vector.shape_cast %126 : vector<1x8x16x8xf32> to vector<8x16x8xf32>
    %128 = vector.shape_cast %125 : vector<8x16x8xf32> to vector<1x8x16x8xf32>
    tpu.vector_store %arg9[%c0_81, %c0_82, %c0_83, %c0_84], %128 {strides = array<i32>} : memref<1x8x16x8xf32, #tpu.memory_space<vmem>>, vector<1x8x16x8xf32>,
    return
  }
  func.func @transform_0(%arg0: i32, %arg1: i32) -> (i32, i32, i32, i32) {
    %c0_i32 = arith.constant 0 : i32
    %c0_i32_0 = arith.constant 0 : i32
    %c0_i32_1 = arith.constant 0 : i32
    %c0_i32_2 = arith.constant 0 : i32
    return %arg0, %c0_i32, %c0_i32_0, %c0_i32_1 : i32, i32, i32, i32
  }
  func.func @transform_1(%arg0: i32, %arg1: i32) -> (i32, i32) {
    %c0_i32 = arith.constant 0 : i32
    %c0_i32_0 = arith.constant 0 : i32
    %c0_i32_1 = arith.constant 0 : i32
    return %c0_i32, %c0_i32_0 : i32, i32
  }
  func.func @transform_2(%arg0: i32, %arg1: i32) -> (i32, i32) {
    %c0_i32 = arith.constant 0 : i32
    %c0_i32_0 = arith.constant 0 : i32
    %c0_i32_1 = arith.constant 0 : i32
    return %c0_i32, %c0_i32_0 : i32, i32
  }
  func.func @transform_3(%arg0: i32, %arg1: i32) -> (i32, i32, i32) {
    %c0_i32 = arith.constant 0 : i32
    %c0_i32_0 = arith.constant 0 : i32
    %c0_i32_1 = arith.constant 0 : i32
    %c0_i32_2 = arith.constant 0 : i32
    return %c0_i32, %c0_i32_0, %c0_i32_1 : i32, i32, i32
  }
  func.func @transform_4(%arg0: i32, %arg1: i32) -> (i32, i32) {
    %c0_i32 = arith.constant 0 : i32
    %c0_i32_0 = arith.constant 0 : i32
    %c0_i32_1 = arith.constant 0 : i32
    return %c0_i32, %c0_i32_0 : i32, i32
  }
  func.func @transform_5(%arg0: i32, %arg1: i32) -> (i32, i32) {
    %c0_i32 = arith.constant 0 : i32
    %c0_i32_0 = arith.constant 0 : i32
    %c0_i32_1 = arith.constant 0 : i32
    return %c0_i32, %c0_i32_0 : i32, i32
  }
  func.func @transform_6(%arg0: i32, %arg1: i32) -> (i32, i32) {
    %c0_i32 = arith.constant 0 : i32
    %c0_i32_0 = arith.constant 0 : i32
    %c0_i32_1 = arith.constant 0 : i32
    return %c0_i32, %c0_i32_0 : i32, i32
  }
  func.func @transform_7(%arg0: i32, %arg1: i32) -> (i32, i32, i32, i32) {
    %c0_i32 = arith.constant 0 : i32
    %c0_i32_0 = arith.constant 0 : i32
    %c0_i32_1 = arith.constant 0 : i32
    return %arg0, %arg1, %c0_i32, %c0_i32_0 : i32, i32, i32, i32
  }
}

</mosaic_0001>

<bundles_post_ra>
// kernel: tpu_custom_call.1
= control target key start
LH: loop header
LB: loop body
LE: loop exit
PB: predicated region body
PF: predicated region fallthrough
CT: control target
= control target key end

     0   :  { %s2287_s24 = smov 0   ;;  %s2289_s25 = smov 0   ;;  %s3034_s0 = inlined_call_operand.vmem [shape: f32[2,16,16,8], index: 0, kind: input, shape index: {}]   ;;  %s3035_s1 = inlined_call_operand.vmem [shape: bf16[8,32], index: 1, kind: input, shape index: {}]   ;;  %s3036_s2 = inlined_call_operand.vmem [shape: f32[1,32], index: 2, kind: input, shape index: {}]   ;;  %s3037_s3 = inlined_call_operand.vmem [shape: f32[3,3,32], index: 3, kind: input, shape index: {}]   ;;  %s3038_s4 = inlined_call_operand.vmem [shape: f32[1,32], index: 4, kind: input, shape index: {}]   ;;  %s3039_s5 = inlined_call_operand.vmem [shape: bf16[32,8], index: 5, kind: input, shape index: {}]   ;;  %s3040_s6 = inlined_call_operand.vmem [shape: f32[1,8], index: 6, kind: input, shape index: {}]   ;;  %s3041_s7 = inlined_call_operand.vmem [shape: f32[2,16,16,8], index: 7, kind: output, shape index: {}]  }
   0x1   :  { %s2291_s26 = smov 0   ;;  %s2293_s27 = smov 0  }
   0x2   :  { %s2295_s28 = smov 0  }
   0x3 LB: > { %s26_s29 = sadd.s32 1, %s2234_s26  ;;  %s29_s30 = sadd.s32 1, %s2238_s27  ;;  %s2242_s28 = sphi %s2295_s28, %s17_s28   ;;  %s2238_s27 = sphi %s2293_s27, %s3045_s27   ;;  %s2234_s26 = sphi %s2291_s26, %s3044_s26   ;;  %s2230_s25 = sphi %s2289_s25, %s3043_s25   ;;  %s2226_s24 = sphi %s2287_s24, %s3042_s24  }
   0x4   : > { %p27_p0 = scmp.ge.s32.totalorder %s26_s29, 2  ;;  %p2016_p1 = scmp.ge.s32.totalorder %s2242_s28, 1 }
   0x5   : > { %p251_p2 = scmp.lt.s32.totalorder %s2242_s28, 5 }
   0x6   : > { %s3047_s29 = smov (%p27_p0, %s26_s29), 0  ;;  %s3049_s30 = smov (!%p27_p0, %s29_s30), %s2238_s27 }
   0x7   : > { %p252_p3 = pnand %p2016_p1, %p251_p2  ;;  %p31_p4 = scmp.ge.s32.totalorder %s3049_s30, 2 }
   0x8   : > { %p288_p5 = scmp.lt.s32.totalorder (!%p252_p3), %s2230_s25, 1  ;;  %s2019_s8 = sshll.u32 (!%p252_p3), %s2226_s24, 3 }
   0x9   : > { %s3051_s30 = smov (%p31_p4, %s3049_s30), 0  ;;  %255 = sbr.rel (%p252_p3) target bundleno = 610 (0x262), region = 48 }
   0xa   : > { %p296_p6 = scmp.lt.s32.totalorder (!%p252_p3), %s2019_s8, 15  ;;  %s2024_s9 = sadd.s32 (!%p252_p3), 4294967295, %s2019_s8 }
   0xb   : > { %p307_p7 = scmp.gt.s32.totalorder (!%p252_p3), %s2024_s9, 0  ;;  %p2025_p8 = scmp.lt.s32.totalorder (!%p252_p3), %s2024_s9, 6 }
   0xe   : > { %vm312_vm0 = vcmask 257027   ;;  %s3053_s25 = smov (!%p288_p5, %s2230_s25), 1  ;;  %v2244_v0 = vmov 0   ;;  %s3055_s8 = smov (!%p296_p6, %s2019_s8), 15  ;;  %vm325_vm1 = vcmask 253952  }
   0xf   : > { %314 = vst.msk [vmem:[#allocation2 + $0x18] sm:$0x8] %vm312_vm0, %v2244_v0  ;;  %s2069_s10 = sshll.u32 %s3053_s25, 8  ;;  %s2021_s11 = sshll.u32 %s3053_s25, 5 }
  0x10   : > { %315 = vst.msk [vmem:[#allocation2 + $0x2c] sm:$0x8] %vm312_vm0, %v2244_v0  ;;  %s2326_s14 = scalar_lea.vmem %s3034_s0, %s2069_s10  ;;  %s2020_s15 = sshll.u32 %s3055_s8, 1 }
  0x11   : > { %316 = vst.msk [vmem:[#allocation2 + $0x40] sm:$0x8] %vm312_vm0, %v2244_v0  ;;  %s300_s16 = sadd.s32 %s2021_s11, %s2020_s15 }
  0x12   : > { %317 = vst.msk [vmem:[#allocation2 + $0x54] sm:$0x8] %vm312_vm0, %v2244_v0  ;;  %s2022_s17 = sshll.u32 %s300_s16, 3 }
  0x13   : > { %318 = vst.msk [vmem:[#allocation2 + $0x68] sm:$0x8] %vm312_vm0, %v2244_v0  ;;  %s2334_s20 = scalar_lea.vmem %s3041_s7, %s2022_s17 }
  0x14   : > { %319 = vst.msk [vmem:[#allocation2 + $0x7c] sm:$0x8] %vm312_vm0, %v2244_v0  ;;  %s308_s21 = scalar_select %p307_p7, %s2024_s9, 0 }
  0x15   : > { %320 = vst.msk [vmem:[#allocation2 + $0x90] sm:$0x8] %vm312_vm0, %v2244_v0 }
  0x16   : > { %321 = vst.msk [vmem:[#allocation2 + $0xa4] sm:$0x8] %vm312_vm0, %v2244_v0  ;;  %s3057_s21 = smov (!%p2025_p8, %s308_s21), 6 }
  0x17   : > { %322 = vst.msk [vmem:[#allocation2 + $0xb8] sm:$0x8] %vm312_vm0, %v2244_v0  ;;  %s2343_s22 = ssub.s32 %s2024_s9, %s3057_s21 }
  0x18   : > { %323 = vst.msk [vmem:[#allocation2 + $0xcc] sm:$0x8] %vm312_vm0, %v2244_v0  ;;  %p2030_p9 = scmp.ge.s32.totalorder %s2343_s22, 0 }
  0x19   : > { %327 = vst.msk [vmem:[#allocation2 + $0x24] sm:$0x1] %vm325_vm1, %v2244_v0 }
  0x1a   : > { %328 = vst.msk [vmem:[#allocation2 + $0x38] sm:$0x1] %vm325_vm1, %v2244_v0 }
  0x1b   : > { %329 = vst.msk [vmem:[#allocation2 + $0x4c] sm:$0x1] %vm325_vm1, %v2244_v0 }
  0x1c   : > { %330 = vst.msk [vmem:[#allocation2 + $0x60] sm:$0x1] %vm325_vm1, %v2244_v0 }
  0x1d   : > { %331 = vst.msk [vmem:[#allocation2 + $0x74] sm:$0x1] %vm325_vm1, %v2244_v0 }
  0x1e   : > { %332 = vst.msk [vmem:[#allocation2 + $0x88] sm:$0x1] %vm325_vm1, %v2244_v0  ;;  %341 = sbr.rel (%p2030_p9) target bundleno = 38 (0x26), region = 52 }
  0x1f   : > { %333 = vst.msk [vmem:[#allocation2 + $0x9c] sm:$0x1] %vm325_vm1, %v2244_v0 }
  0x20   : > { %334 = vst.msk [vmem:[#allocation2 + $0xb0] sm:$0x1] %vm325_vm1, %v2244_v0 }
  0x21   : > { %335 = vst.msk [vmem:[#allocation2 + $0xc4] sm:$0x1] %vm325_vm1, %v2244_v0 }
  0x22   : > { %336 = vst.msk [vmem:[#allocation2 + $0xd8] sm:$0x1] %vm325_vm1, %v2244_v0 }
  0x23   : > { %vm343_vm2 = vcmask 257024   ;;  %v2245_v1 = vmov 0  }
  0x24   : > { %344 = vst.msk [vmem:[#allocation2 + $0x1c] sm:$0xf] %vm343_vm2, %v2245_v1 }
  0x25   : > { %345 = vst.msk [vmem:[#allocation2 + $0x20] sm:$0xf] %vm343_vm2, %v2245_v1 }
  0x26 PF: > { %p2031_p10 = scmp.le.s32.totalorder %s2343_s22, 0 }
  0x28   : > { %349 = sbr.rel (%p2031_p10) target bundleno = 48 (0x30), region = 56 }
  0x2d   : > { %vm351_vm3 = vcmask 257024   ;;  %v2246_v2 = vmov 0  }
  0x2e   : > { %352 = vst.msk [vmem:[#allocation2 + $0xd0] sm:$0xf] %vm351_vm3, %v2246_v2 }
  0x2f   : > { %353 = vst.msk [vmem:[#allocation2 + $0xd4] sm:$0xf] %vm351_vm3, %v2246_v2 }
  0x30 PF: > { %v386_v3 = vld [vmem:[%s3035_s1] sm:$0xf]  ;;  %vm422_vm4 = vcmask 1043456   ;;  %s2032_s8 = sshll.u32 %s3057_s21, 4  ;;  %vm391_vm5 = vcmask 64512   ;;  %s525_s12 = ssub.s32 1, %s2343_s22 }
  0x31   : > { %v424_v4 = vsel %vm422_vm4, %v386_v3, 0  ;;  %s2352_s9 = scalar_lea.vmem %s2326_s14, %s2032_s8  ;;  %v2387_v35 = vld [vmem:[%s3036_s2] ss:$0 sm:$0xff]  ;;  %s2072_s13 = smul.u32 20, %s525_s12  ;;  %vm529_vm6 = vcmask 257024   ;;  %vm683_vm7 = vcmask 1046528  }
  0x32   : > { %433 = vmatpush.bf16.msra.mxu0 %v424_v4  ;;  %2136 = vmatpush.bf16.msra.mxu2 %v424_v4  ;;  %v356_v5 = vld [vmem:[%s2352_s9] sm:$0xff]  ;;  %v357_v6 = vld [vmem:[%s2352_s9 + $0x8] sm:$0xff]  ;;  %v366_v7 = vld [vmem:[%s2352_s9 + $0x50] sm:$0xff]  ;;  %vm822_vm8 = vcmask 1045504   ;;  %vm1707_vm9 = vcmask 1040384   ;;  %vm1792_vm10 = vcmask 261120  }
  0x33   : > { %v376_v8 = vpack.c.bf16 %v357_v6, %v356_v5  ;;  %v367_v9 = vld [vmem:[%s2352_s9 + $0x58] sm:$0xff]  ;;  %v358_v11 = vld [vmem:[%s2352_s9 + $0x10] sm:$0xff]  ;;  %v368_v13 = vld [vmem:[%s2352_s9 + $0x60] sm:$0xff]  ;;  %s2391_s15 = scalar_lea.vmem [#allocation2], %s2072_s13 }
  0x34   : > { %v381_v10 = vpack.c.bf16 %v367_v9, %v366_v7  ;;  %v359_v12 = vld [vmem:[%s2352_s9 + $0x18] sm:$0xff]  ;;  %v369_v14 = vld [vmem:[%s2352_s9 + $0x68] sm:$0xff]  ;;  %v360_v17 = vld [vmem:[%s2352_s9 + $0x20] sm:$0xff] }
  0x35   : > { %2033 = vmatmul.msk.bf16.vlgmr.msra.gmra.mxu0 %vm391_vm5, %v376_v8  ;;  %v377_v15 = vpack.c.bf16 %v359_v12, %v358_v11  ;;  %v382_v16 = vpack.c.bf16 %v369_v14, %v368_v13  ;;  %v361_v18 = vld [vmem:[%s2352_s9 + $0x28] sm:$0xff]  ;;  %v370_v19 = vld [vmem:[%s2352_s9 + $0x70] sm:$0xff]  ;;  %v371_v20 = vld [vmem:[%s2352_s9 + $0x78] sm:$0xff] }
  0x36   : > { %2038 = vmatmul.msk.bf16.vlgmr.msra.gmra.mxu2 %vm391_vm5, %v381_v10  ;;  %v378_v21 = vpack.c.bf16 %v361_v18, %v360_v17  ;;  %v383_v22 = vpack.c.bf16 %v371_v20, %v370_v19  ;;  %v362_v23 = vld [vmem:[%s2352_s9 + $0x30] sm:$0xff]  ;;  %v363_v24 = vld [vmem:[%s2352_s9 + $0x38] sm:$0xff]  ;;  %v372_v25 = vld [vmem:[%s2352_s9 + $0x80] sm:$0xff] }
  0x37   : > { %v373_v26 = vld [vmem:[%s2352_s9 + $0x88] sm:$0xff]  ;;  %v379_v27 = vpack.c.bf16 %v363_v24, %v362_v23  ;;  %v364_v29 = vld [vmem:[%s2352_s9 + $0x40] sm:$0xff]  ;;  %v374_v31 = vld [vmem:[%s2352_s9 + $0x90] sm:$0xff] }
  0x38   : > { %v384_v28 = vpack.c.bf16 %v373_v26, %v372_v25  ;;  %v365_v30 = vld [vmem:[%s2352_s9 + $0x48] sm:$0xff]  ;;  %v375_v32 = vld [vmem:[%s2352_s9 + $0x98] sm:$0xff] }
  0x39   : > { %v380_v33 = vpack.c.bf16 %v365_v30, %v364_v29  ;;  %v385_v34 = vpack.c.bf16 %v375_v32, %v374_v31  ;;  %v2074_v24 = vld [vmem:[%s3039_s5 + $0x8] sm:$0xff] }
  0x3a   : > { %1823 = vmatpush.bf16.msra.mxu1 %v2074_v24  ;;  %2137 = vmatpush.bf16.msra.mxu3 %v2074_v24 }
  0x45   : > { %2034 = vmatmul.msk.bf16.gmra.mxu0 %vm391_vm5, %v377_v15 }
  0x46   : > { %2039 = vmatmul.msk.bf16.gmra.mxu2 %vm391_vm5, %v382_v16 }
  0x55   : > { %2035 = vmatmul.msk.bf16.gmra.mxu0 %vm391_vm5, %v378_v21 }
  0x56   : > { %2040 = vmatmul.msk.bf16.gmra.mxu2 %vm391_vm5, %v383_v22 }
  0x65   : > { %2036 = vmatmul.msk.bf16.gmra.mxu0 %vm391_vm5, %v379_v27 }
  0x66   : > { %2041 = vmatmul.msk.bf16.gmra.mxu2 %vm391_vm5, %v384_v28  ;;  %v2073_v28 = vld [vmem:[%s3039_s5] sm:$0xff] }
  0x67   : > { %1824 = vmatpush.bf16.msra.mxu1 %v2073_v28  ;;  %2138 = vmatpush.bf16.msra.mxu3 %v2073_v28 }
  0x75   : > { %2037 = vmatmul.msk.bf16.gmra.mxu0 %vm391_vm5, %v380_v33 }
  0x76   : > { %2042 = vmatmul.msk.bf16.gmra.mxu2 %vm391_vm5, %v385_v34 }
  0xb2   : > { %v435_v36 = vpop.f32.mrf.mxu0 }
  0xb3   : > { %v436_v37 = vadd.f32 %v2387_v35, %v435_v36 }
  0xb5   : > { %v485_v38 = vmax.f32 %v436_v37, 0.0 }
  0xb7   : > { %v505_v39 = vpack.c.bf16 %v485_v38, %v485_v38 }
  0xb9   : > { %530 = vst.msk [vmem:[%s2391_s15 + $0x8] sm:$0xf] %vm529_vm6, %v505_v39  ;;  %v460_v40 = vpop.f32.mrf.mxu2 }
  0xba   : > { %v461_v41 = vadd.f32 %v2387_v35, %v460_v40  ;;  %v437_v42 = vpop.f32.mrf.mxu0 }
  0xbb   : > { %v438_v43 = vadd.f32 %v2387_v35, %v437_v42 }
  0xbc   : > { %v495_v44 = vmax.f32 %v461_v41, 0.0 }
  0xbd   : > { %v486_v45 = vmax.f32 %v438_v43, 0.0 }
  0xbe   : > { %v515_v46 = vpack.c.bf16 %v495_v44, %v495_v44 }
  0xbf   : > { %v506_v47 = vpack.c.bf16 %v486_v45, %v486_v45 }
  0xc0   : > { %540 = vst.msk [vmem:[%s2391_s15 + $0x6c] sm:$0xf] %vm529_vm6, %v515_v46 }
  0xc1   : > { %531 = vst.msk [vmem:[%s2391_s15 + $0xc] sm:$0xf] %vm529_vm6, %v506_v47  ;;  %v462_v48 = vpop.f32.mrf.mxu2 }
  0xc2   : > { %v463_v49 = vadd.f32 %v2387_v35, %v462_v48  ;;  %v440_v50 = vpop.f32.mrf.mxu0 }
  0xc3   : > { %v441_v51 = vadd.f32 %v2387_v35, %v440_v50 }
  0xc4   : > { %v496_v52 = vmax.f32 %v463_v49, 0.0 }
  0xc5   : > { %v487_v53 = vmax.f32 %v441_v51, 0.0 }
  0xc6   : > { %v516_v54 = vpack.c.bf16 %v496_v52, %v496_v52 }
  0xc7   : > { %v507_v55 = vpack.c.bf16 %v487_v53, %v487_v53 }
  0xc8   : > { %541 = vst.msk [vmem:[%s2391_s15 + $0x70] sm:$0xf] %vm529_vm6, %v516_v54 }
  0xc9   : > { %532 = vst.msk [vmem:[%s2391_s15 + $0x1c] sm:$0xf] %vm529_vm6, %v507_v55  ;;  %v465_v56 = vpop.f32.mrf.mxu2  ;;  %v2461_v55 = vld [vmem:[%s3037_s3] ss:$0 sm:$0xff] }
  0xca   : > { %v466_v57 = vadd.f32 %v2387_v35, %v465_v56  ;;  %v442_v58 = vpop.f32.mrf.mxu0  ;;  %v2466_v56 = vld [vmem:[%s3037_s3 + $0x1] ss:$0 sm:$0xff] }
  0xcb   : > { %v443_v59 = vadd.f32 %v2387_v35, %v442_v58 }
  0xcc   : > { %v497_v60 = vmax.f32 %v466_v57, 0.0  ;;  %v2471_v57 = vld [vmem:[%s3037_s3 + $0x2] ss:$0 sm:$0xff] }
  0xcd   : > { %v488_v61 = vmax.f32 %v443_v59, 0.0 }
  0xce   : > { %v517_v62 = vpack.c.bf16 %v497_v60, %v497_v60 }
  0xcf   : > { %v508_v63 = vpack.c.bf16 %v488_v61, %v488_v61 }
  0xd0   : > { %542 = vst.msk [vmem:[%s2391_s15 + $0x80] sm:$0xf] %vm529_vm6, %v517_v62 }
  0xd1   : > { %533 = vst.msk [vmem:[%s2391_s15 + $0x20] sm:$0xf] %vm529_vm6, %v508_v63  ;;  %v467_v0 = vpop.f32.mrf.mxu2 }
  0xd2   : > { %v468_v1 = vadd.f32 %v2387_v35, %v467_v0  ;;  %v445_v2 = vpop.f32.mrf.mxu0 }
  0xd3   : > { %v446_v3 = vadd.f32 %v2387_v35, %v445_v2 }
  0xd4   : > { %v498_v4 = vmax.f32 %v468_v1, 0.0 }
  0xd5   : > { %v489_v5 = vmax.f32 %v446_v3, 0.0 }
  0xd6   : > { %v518_v6 = vpack.c.bf16 %v498_v4, %v498_v4 }
  0xd7   : > { %v509_v7 = vpack.c.bf16 %v489_v5, %v489_v5 }
  0xd8   : > { %543 = vst.msk [vmem:[%s2391_s15 + $0x84] sm:$0xf] %vm529_vm6, %v518_v6 }
  0xd9   : > { %534 = vst.msk [vmem:[%s2391_s15 + $0x30] sm:$0xf] %vm529_vm6, %v509_v7  ;;  %v470_v8 = vpop.f32.mrf.mxu2 }
  0xda   : > { %v471_v9 = vadd.f32 %v2387_v35, %v470_v8  ;;  %v447_v10 = vpop.f32.mrf.mxu0 }
  0xdb   : > { %v448_v11 = vadd.f32 %v2387_v35, %v447_v10 }
  0xdc   : > { %v499_v12 = vmax.f32 %v471_v9, 0.0 }
  0xdd   : > { %v490_v13 = vmax.f32 %v448_v11, 0.0 }
  0xde   : > { %v519_v14 = vpack.c.bf16 %v499_v12, %v499_v12  ;;  %v2489_v12 = vld [vmem:[%s3037_s3 + $0x5] ss:$0 sm:$0xff] }
  0xdf   : > { %v510_v15 = vpack.c.bf16 %v490_v13, %v490_v13  ;;  %v2494_v13 = vld [vmem:[%s3037_s3 + $0x6] ss:$0 sm:$0xff] }
  0xe0   : > { %544 = vst.msk [vmem:[%s2391_s15 + $0x94] sm:$0xf] %vm529_vm6, %v519_v14 }
  0xe1   : > { %535 = vst.msk [vmem:[%s2391_s15 + $0x34] sm:$0xf] %vm529_vm6, %v510_v15  ;;  %v472_v16 = vpop.f32.mrf.mxu2 }
  0xe2   : > { %v473_v17 = vadd.f32 %v2387_v35, %v472_v16  ;;  %v450_v18 = vpop.f32.mrf.mxu0 }
  0xe3   : > { %v451_v19 = vadd.f32 %v2387_v35, %v450_v18 }
  0xe4   : > { %v500_v20 = vmax.f32 %v473_v17, 0.0 }
  0xe5   : > { %v491_v21 = vmax.f32 %v451_v19, 0.0 }
  0xe6   : > { %v520_v22 = vpack.c.bf16 %v500_v20, %v500_v20 }
  0xe7   : > { %v511_v23 = vpack.c.bf16 %v491_v21, %v491_v21 }
  0xe8   : > { %545 = vst.msk [vmem:[%s2391_s15 + $0x98] sm:$0xf] %vm529_vm6, %v520_v22 }
  0xe9   : > { %536 = vst.msk [vmem:[%s2391_s15 + $0x44] sm:$0xf] %vm529_vm6, %v511_v23  ;;  %v475_v25 = vpop.f32.mrf.mxu2 }
  0xea   : > { %v476_v26 = vadd.f32 %v2387_v35, %v475_v25  ;;  %v452_v27 = vpop.f32.mrf.mxu0 }
  0xeb   : > { %v453_v29 = vadd.f32 %v2387_v35, %v452_v27 }
  0xec   : > { %v501_v30 = vmax.f32 %v476_v26, 0.0 }
  0xed   : > { %v492_v31 = vmax.f32 %v453_v29, 0.0 }
  0xee   : > { %v521_v32 = vpack.c.bf16 %v501_v30, %v501_v30 }
  0xef   : > { %v512_v33 = vpack.c.bf16 %v492_v31, %v492_v31 }
  0xf0   : > { %546 = vst.msk [vmem:[%s2391_s15 + $0xa8] sm:$0xf] %vm529_vm6, %v521_v32 }
  0xf1   : > { %537 = vst.msk [vmem:[%s2391_s15 + $0x48] sm:$0xf] %vm529_vm6, %v512_v33  ;;  %v477_v34 = vpop.f32.mrf.mxu2 }
  0xf2   : > { %v478_v36 = vadd.f32 %v2387_v35, %v477_v34  ;;  %v455_v37 = vpop.f32.mrf.mxu0 }
  0xf3   : > { %v456_v38 = vadd.f32 %v2387_v35, %v455_v37 }
  0xf4   : > { %v502_v39 = vmax.f32 %v478_v36, 0.0 }
  0xf5   : > { %v493_v40 = vmax.f32 %v456_v38, 0.0 }
  0xf6   : > { %v522_v41 = vpack.c.bf16 %v502_v39, %v502_v39 }
  0xf7   : > { %v513_v42 = vpack.c.bf16 %v493_v40, %v493_v40 }
  0xf8   : > { %547 = vst.msk [vmem:[%s2391_s15 + $0xac] sm:$0xf] %vm529_vm6, %v522_v41  ;;  %v2517_v41 = vld [vmem:[%s3037_s3 + $0x8] ss:$0 sm:$0xff] }
  0xf9   : > { %538 = vst.msk [vmem:[%s2391_s15 + $0x58] sm:$0xf] %vm529_vm6, %v513_v42  ;;  %v480_v43 = vpop.f32.mrf.mxu2 }
  0xfa   : > { %v481_v44 = vadd.f32 %v2387_v35, %v480_v43  ;;  %v457_v45 = vpop.f32.mrf.mxu0 }
  0xfb   : > { %v458_v46 = vadd.f32 %v2387_v35, %v457_v45 }
  0xfc   : > { %v503_v47 = vmax.f32 %v481_v44, 0.0 }
  0xfd   : > { %v494_v48 = vmax.f32 %v458_v46, 0.0 }
  0xfe   : > { %v523_v49 = vpack.c.bf16 %v503_v47, %v503_v47 }
  0xff   : > { %v514_v50 = vpack.c.bf16 %v494_v48, %v494_v48 }
 0x100   : > { %548 = vst.msk [vmem:[%s2391_s15 + $0xbc] sm:$0xf] %vm529_vm6, %v523_v49 }
 0x101   : > { %539 = vst.msk [vmem:[%s2391_s15 + $0x5c] sm:$0xf] %vm529_vm6, %v514_v50  ;;  %v482_v51 = vpop.f32.mrf.mxu2  ;;  %v2526_v50 = vld [vmem:[%s3037_s3 + $0x9] ss:$0 sm:$0xff] }
 0x102   : > { %v483_v52 = vadd.f32 %v2387_v35, %v482_v51  ;;  %v2476_v35 = vld [vmem:[%s3037_s3 + $0x4] ss:$0 sm:$0xff] }
 0x104   : > { %v504_v53 = vmax.f32 %v483_v52, 0.0 }
 0x106   : > { %v524_v54 = vpack.c.bf16 %v504_v53, %v504_v53 }
 0x108   : > { %549 = vst.msk [vmem:[%s2391_s15 + $0xc0] sm:$0xf] %vm529_vm6, %v524_v54  ;;  %s2075_s15 = sshll.u32 %s2226_s24, 7 }
 0x109   : > { %s2936_s24 = scalar_lea.vmem %s2326_s14, %s2075_s15 }
 0x10f   : > { %v551_v58 = vld [vmem:[#allocation2 + $0x18] sm:$0x8]  ;;  %v552_v59 = vld [vmem:[#allocation2 + $0x1c] sm:$0xff]   ;;  %v756_v60 = vld [vmem:[#allocation2 + $0x24] sm:$0x1] }
 0x110   : > { %v575_v61 = vunpack.c.l.bf16 %v551_v58  ;;  %v576_v62 = vunpack.c.l.bf16 %v552_v59  ;;  %v577_v63 = vunpack.c.h.bf16 %v552_v59  ;;  %v764_v0 = vunpack.c.l.bf16 %v756_v60  ;;  %v912_v1 = vld [vmem:[#allocation2 + $0x2c] sm:$0x8]  ;;  %v2128_v2 = vld [vmem:[#allocation2 + $0x30] sm:$0xff]   ;;  %v1117_v3 = vld [vmem:[#allocation2 + $0x38] sm:$0x1] }
 0x111   : > { %v2478_v4 = vunpack.c.l.bf16 %v2128_v2  ;;  %v2480_v5 = vunpack.c.h.bf16 %v2128_v2  ;;  %v936_v6 = vunpack.c.l.bf16 %v912_v1  ;;  %v1125_v7 = vunpack.c.l.bf16 %v1117_v3  ;;  %v1272_v34 = vld [vmem:[#allocation2 + $0x40] sm:$0x8]  ;;  %v1273_v40 = vld [vmem:[#allocation2 + $0x44] sm:$0xff]  }
 0x112   : > { %v601_v8 = vmul.f32 %v2461_v55, %v575_v61  ;;  %v602_v9 = vmul.f32 %v2461_v55, %v576_v62  ;;  %v603_v10 = vmul.f32 %v2461_v55, %v577_v63  ;;  %v651_v11 = vmul.f32 %v2466_v56, %v576_v62  ;;  %v2531_v58 = vld [vmem:[%s3037_s3 + $0xa] ss:$0 sm:$0xff] }
 0x113   : > { %v652_v14 = vmul.f32 %v2466_v56, %v577_v63  ;;  %v774_v15 = vmul.f32 %v2471_v57, %v576_v62  ;;  %v775_v16 = vmul.f32 %v2471_v57, %v577_v63  ;;  %v776_v17 = vmul.f32 %v2471_v57, %v764_v0  ;;  %v1477_v63 = vld [vmem:[#allocation2 + $0x4c] sm:$0x1] }
 0x114   : > { %v684_v18 = vrot.slane %v651_v11, 1  ;;  %v963_v19 = vmul.f32 %v2476_v35, %v936_v6  ;;  %v964_v20 = vmul.f32 %v2476_v35, %v2478_v4  ;;  %v965_v21 = vmul.f32 %v2476_v35, %v2480_v5 }
 0x115   : > { %v685_v22 = vrot.slane %v652_v14, 1  ;;  %v823_v23 = vrot.slane %v774_v15, 2  ;;  %v824_v24 = vrot.slane %v775_v16, 2  ;;  %v826_v25 = vrot.slane %v776_v17, 2  ;;  %v2126_v16 = vld [vmem:[#allocation2 + $0x80] sm:$0xff]  }
 0x116   : > { %v732_v26 = vadd.f32 %v684_v18, %v601_v8  ;;  %v1013_v27 = vmul.f32 %v2489_v12, %v2478_v4  ;;  %v1014_v28 = vmul.f32 %v2489_v12, %v2480_v5  ;;  %v1135_v29 = vmul.f32 %v2494_v13, %v2478_v4 }
 0x117   : > { %v686_v30 = vsel %vm683_vm7, %v684_v18, %v685_v22  ;;  %v734_v31 = vadd.f32 %v685_v22, %v603_v10  ;;  %v825_v32 = vsel %vm822_vm8, %v823_v23, %v824_v24  ;;  %v827_v33 = vsel %vm822_vm8, %v824_v24, %v826_v25  ;;  %v566_v25 = vld [vmem:[#allocation2 + $0x7c] sm:$0x8] }
 0x118   : > { %v733_v36 = vadd.f32 %v686_v30, %v602_v9  ;;  %v887_v37 = vadd.f32 %v823_v23, %v732_v26  ;;  %v1045_v38 = vrot.slane %v1013_v27, 1  ;;  %v1046_v39 = vrot.slane %v1014_v28, 1 }
 0x119   : > { %v889_v42 = vadd.f32 %v827_v33, %v734_v31  ;;  %v1136_v43 = vmul.f32 %v2494_v13, %v2480_v5  ;;  %v1137_v44 = vmul.f32 %v2494_v13, %v1125_v7  ;;  %v1183_v45 = vrot.slane %v1135_v29, 2  ;;  %v2546_v29 = vld [vmem:[%s3038_s4] ss:$0 sm:$0xff] }
 0x11a   : > { %v888_v46 = vadd.f32 %v825_v32, %v733_v36  ;;  %v987_v47 = vadd.f32 %v963_v19, %v887_v37  ;;  %v1047_v48 = vsel %vm683_vm7, %v1045_v38, %v1046_v39  ;;  %v1296_v49 = vunpack.c.l.bf16 %v1272_v34 }
 0x11b   : > { %v989_v51 = vadd.f32 %v965_v21, %v889_v42  ;;  %v1184_v52 = vrot.slane %v1136_v43, 2  ;;  %v1186_v53 = vrot.slane %v1137_v44, 2  ;;  %v1297_v54 = vunpack.c.l.bf16 %v1273_v40 }
 0x11c   : > { %v988_v59 = vadd.f32 %v964_v20, %v888_v46  ;;  %v1093_v60 = vadd.f32 %v1045_v38, %v987_v47  ;;  %v1298_v61 = vunpack.c.h.bf16 %v1273_v40  ;;  %v1323_v62 = vmul.f32 %v2517_v41, %v1296_v49  ;;  %v761_v40 = vld [vmem:[#allocation2 + $0x88] sm:$0x1] }
 0x11d   : > { %v1095_v0 = vadd.f32 %v1046_v39, %v989_v51  ;;  %v1185_v1 = vsel %vm822_vm8, %v1183_v45, %v1184_v52  ;;  %v1187_v2 = vsel %vm822_vm8, %v1184_v52, %v1186_v53  ;;  %v1324_v3 = vmul.f32 %v2517_v41, %v1297_v54 }
 0x11e   : > { %v1094_v6 = vadd.f32 %v1047_v48, %v988_v59  ;;  %v1247_v7 = vadd.f32 %v1183_v45, %v1093_v60  ;;  %v1325_v8 = vmul.f32 %v2517_v41, %v1298_v61  ;;  %v1373_v9 = vmul.f32 %v2526_v50, %v1297_v54 }
 0x11f   : > { %v1249_v10 = vadd.f32 %v1187_v2, %v1095_v0  ;;  %v1374_v11 = vmul.f32 %v2526_v50, %v1298_v61  ;;  %v1485_v14 = vunpack.c.l.bf16 %v1477_v63  ;;  %v1495_v15 = vmul.f32 %v2531_v58, %v1297_v54 }
 0x120   : > { %v1248_v17 = vadd.f32 %v1185_v1, %v1094_v6  ;;  %v1347_v18 = vadd.f32 %v1323_v62, %v1247_v7  ;;  %v1405_v19 = vrot.slane %v1373_v9, 1  ;;  %v1496_v20 = vmul.f32 %v2531_v58, %v1298_v61 }
 0x121   : > { %v1349_v21 = vadd.f32 %v1325_v8, %v1249_v10  ;;  %v1406_v22 = vrot.slane %v1374_v11, 1  ;;  %v1497_v23 = vmul.f32 %v2531_v58, %v1485_v14  ;;  %v1543_v24 = vrot.slane %v1495_v15, 2  ;;  %v928_v10 = vld [vmem:[#allocation2 + $0x94] sm:$0xff]  }
 0x122   : > { %v1348_v26 = vadd.f32 %v1324_v3, %v1248_v17  ;;  %v1453_v27 = vadd.f32 %v1405_v19, %v1347_v18  ;;  %v1544_v28 = vrot.slane %v1496_v20, 2  ;;  %v2086_v30 = vunpack.c.l.bf16 %v2126_v16  ;;  %v927_v3 = vld [vmem:[#allocation2 + $0x90] sm:$0x8] }
 0x123   : > { %v1407_v31 = vsel %vm683_vm7, %v1405_v19, %v1406_v22  ;;  %v1455_v32 = vadd.f32 %v1406_v22, %v1349_v21  ;;  %v1546_v33 = vrot.slane %v1497_v23, 2  ;;  %v2087_v34 = vunpack.c.h.bf16 %v2126_v16 }
 0x124   : > { %v1454_v36 = vadd.f32 %v1407_v31, %v1348_v26  ;;  %v1545_v37 = vsel %vm822_vm8, %v1543_v24, %v1544_v28  ;;  %v1607_v38 = vadd.f32 %v1543_v24, %v1453_v27  ;;  %v590_v39 = vunpack.c.l.bf16 %v566_v25  ;;  %v1122_v25 = vld [vmem:[#allocation2 + $0x9c] sm:$0x1] }
 0x125   : > { %v1547_v42 = vsel %vm822_vm8, %v1544_v28, %v1546_v33  ;;  %v617_v43 = vmul.f32 %v2461_v55, %v2086_v30  ;;  %v618_v44 = vmul.f32 %v2461_v55, %v2087_v34  ;;  %v661_v45 = vmul.f32 %v2466_v56, %v2086_v30 }
 0x126   : > { %v1608_v46 = vadd.f32 %v1545_v37, %v1454_v36  ;;  %v1609_v47 = vadd.f32 %v1547_v42, %v1455_v32  ;;  %v1635_v48 = vadd.f32 %v2546_v29, %v1607_v38  ;;  %v616_v49 = vmul.f32 %v2461_v55, %v590_v39  ;;  %v2134_v42 = vld [vmem:[#allocation2 + $0xa8] sm:$0xff]  }
 0x127   : > { %v662_v51 = vmul.f32 %v2466_v56, %v2087_v34  ;;  %v699_v52 = vrot.slane %v661_v45, 1  ;;  %v769_v53 = vunpack.c.l.bf16 %v761_v40  ;;  %v789_v54 = vmul.f32 %v2471_v57, %v2086_v30  ;;  %v1287_v40 = vld [vmem:[#allocation2 + $0xa4] sm:$0x8] }
 0x128   : > { %v1636_v59 = vadd.f32 %v2546_v29, %v1608_v46  ;;  %v1637_v60 = vadd.f32 %v2546_v29, %v1609_v47  ;;  %v1659_v61 = vmax.f32 %v1635_v48, 0.0  ;;  %v790_v62 = vmul.f32 %v2471_v57, %v2087_v34 }
 0x129   : > { %v700_v63 = vrot.slane %v662_v51, 1  ;;  %v747_v0 = vadd.f32 %v699_v52, %v616_v49  ;;  %v791_v1 = vmul.f32 %v2471_v57, %v769_v53  ;;  %v848_v2 = vrot.slane %v789_v54, 2 }
 0x12a   : > { %v1660_v6 = vmax.f32 %v1636_v59, 0.0  ;;  %v1661_v7 = vmax.f32 %v1637_v60, 0.0  ;;  %v1708_v8 = vrot.slane %v1659_v61, 7  ;;  %v849_v9 = vrot.slane %v790_v62, 2 }
 0x12b   : > { %v701_v11 = vsel %vm683_vm7, %v699_v52, %v700_v63  ;;  %v749_v14 = vadd.f32 %v700_v63, %v618_v44  ;;  %v851_v15 = vrot.slane %v791_v1, 2  ;;  %v902_v16 = vadd.f32 %v848_v2, %v747_v0  ;;  %v1482_v0 = vld [vmem:[#allocation2 + $0xb0] sm:$0x1] }
 0x12c   : > { %v1709_v17 = vrot.slane %v1660_v6, 7  ;;  %v1711_v18 = vrot.slane %v1661_v7, 7  ;;  %v748_v19 = vadd.f32 %v701_v11, %v617_v43  ;;  %v850_v20 = vsel %vm822_vm8, %v848_v2, %v849_v9 }
 0x12d   : > { %v852_v21 = vsel %vm822_vm8, %v849_v9, %v851_v15  ;;  %v951_v22 = vunpack.c.l.bf16 %v927_v3  ;;  %v952_v23 = vunpack.c.l.bf16 %v928_v10  ;;  %v953_v24 = vunpack.c.h.bf16 %v928_v10 }
 0x12e   : > { %v1710_v26 = vsel %vm1707_vm9, %v1708_v8, %v1709_v17  ;;  %v1712_v27 = vsel %vm1707_vm9, %v1709_v17, %v1711_v18  ;;  %v903_v28 = vadd.f32 %v850_v20, %v748_v19  ;;  %v904_v30 = vadd.f32 %v852_v21, %v749_v14  ;;  %v554_v17 = vld [vmem:[#allocation2 + $0x2c] sm:$0x8] }
 0x12f   : > { %v1764_v31 = vpack.c.bf16 %v1712_v27, %v1710_v26  ;;  %v978_v32 = vmul.f32 %v2476_v35, %v951_v22  ;;  %v979_v33 = vmul.f32 %v2476_v35, %v952_v23  ;;  %v980_v34 = vmul.f32 %v2476_v35, %v953_v24 }
 0x130   : > { %v1023_v36 = vmul.f32 %v2489_v12, %v952_v23  ;;  %v1024_v37 = vmul.f32 %v2489_v12, %v953_v24  ;;  %v1130_v38 = vunpack.c.l.bf16 %v1122_v25  ;;  %v1150_v39 = vmul.f32 %v2494_v13, %v952_v23 }
 0x131   : > { %2058 = vmatmul.msk.bf16.vlgmr.msra.gmra.mxu1 %vm1792_vm10, %v1764_v31  ;;  %v1002_v43 = vadd.f32 %v978_v32, %v902_v16  ;;  %v1003_v44 = vadd.f32 %v979_v33, %v903_v28  ;;  %v1004_v45 = vadd.f32 %v980_v34, %v904_v30  ;;  %v1151_v46 = vmul.f32 %v2494_v13, %v953_v24 }
 0x132   : > { %v1060_v47 = vrot.slane %v1023_v36, 1  ;;  %v1061_v48 = vrot.slane %v1024_v37, 1  ;;  %v1152_v49 = vmul.f32 %v2494_v13, %v1130_v38  ;;  %v1208_v51 = vrot.slane %v1150_v39, 2  ;;  %v757_v36 = vld [vmem:[#allocation2 + $0x38] sm:$0x1] }
 0x133   : > { %v1209_v52 = vrot.slane %v1151_v46, 2  ;;  %v2576_v53 = vunpack.c.l.bf16 %v2134_v42  ;;  %v2578_v54 = vunpack.c.h.bf16 %v2134_v42  ;;  %v1311_v59 = vunpack.c.l.bf16 %v1287_v40 }
 0x134   : > { %v1062_v60 = vsel %vm683_vm7, %v1060_v47, %v1061_v48  ;;  %v1108_v61 = vadd.f32 %v1060_v47, %v1002_v43  ;;  %v1110_v62 = vadd.f32 %v1061_v48, %v1004_v45  ;;  %v1211_v63 = vrot.slane %v1152_v49, 2 }
 0x135   : > { %v1109_v1 = vadd.f32 %v1062_v60, %v1003_v44  ;;  %v1210_v2 = vsel %vm822_vm8, %v1208_v51, %v1209_v52  ;;  %v1338_v3 = vmul.f32 %v2517_v41, %v1311_v59  ;;  %v1339_v6 = vmul.f32 %v2517_v41, %v2576_v53 }
 0x136   : > { %v1212_v7 = vsel %vm822_vm8, %v1209_v52, %v1211_v63  ;;  %v1262_v8 = vadd.f32 %v1208_v51, %v1108_v61  ;;  %v1340_v9 = vmul.f32 %v2517_v41, %v2578_v54  ;;  %v1383_v10 = vmul.f32 %v2526_v50, %v2576_v53 }
 0x137   : > { %v1263_v11 = vadd.f32 %v1210_v2, %v1109_v1  ;;  %v1264_v14 = vadd.f32 %v1212_v7, %v1110_v62  ;;  %v1384_v15 = vmul.f32 %v2526_v50, %v2578_v54  ;;  %v1490_v16 = vunpack.c.l.bf16 %v1482_v0  ;;  %v915_v1 = vld [vmem:[#allocation2 + $0x40] sm:$0x8] }
 0x138   : > { %v1362_v18 = vadd.f32 %v1338_v3, %v1262_v8  ;;  %v1420_v19 = vrot.slane %v1383_v10, 1  ;;  %v1510_v20 = vmul.f32 %v2531_v58, %v2576_v53  ;;  %v1511_v21 = vmul.f32 %v2531_v58, %v2578_v54  ;;  %v916_v8 = vld [vmem:[#allocation2 + $0x44] sm:$0xff]  }
 0x139   : > { %v1363_v22 = vadd.f32 %v1339_v6, %v1263_v11  ;;  %v1364_v23 = vadd.f32 %v1340_v9, %v1264_v14  ;;  %v1421_v24 = vrot.slane %v1384_v15, 1  ;;  %v1512_v25 = vmul.f32 %v2531_v58, %v1490_v16  ;;  %v1118_v14 = vld [vmem:[#allocation2 + $0x4c] sm:$0x1] }
 0x13a   : > { %v1468_v26 = vadd.f32 %v1420_v19, %v1362_v18  ;;  %v1568_v27 = vrot.slane %v1510_v20, 2  ;;  %v1569_v28 = vrot.slane %v1511_v21, 2  ;;  %v578_v30 = vunpack.c.l.bf16 %v554_v17 }
 0x13b   : > { %v1422_v31 = vsel %vm683_vm7, %v1420_v19, %v1421_v24  ;;  %v1470_v32 = vadd.f32 %v1421_v24, %v1364_v23  ;;  %v1571_v33 = vrot.slane %v1512_v25, 2  ;;  %v605_v34 = vmul.f32 %v2461_v55, %v2478_v4 }
 0x13c   : > { %v1469_v37 = vadd.f32 %v1422_v31, %v1363_v22  ;;  %v1570_v38 = vsel %vm822_vm8, %v1568_v27, %v1569_v28  ;;  %v1622_v39 = vadd.f32 %v1568_v27, %v1468_v26  ;;  %v604_v40 = vmul.f32 %v2461_v55, %v578_v30  ;;  %v2132_v31 = vld [vmem:[#allocation2 + $0x58] sm:$0xff]  }
 0x13d   : > { %v1572_v42 = vsel %vm822_vm8, %v1569_v28, %v1571_v33  ;;  %v606_v43 = vmul.f32 %v2461_v55, %v2480_v5  ;;  %v653_v44 = vmul.f32 %v2466_v56, %v2478_v4  ;;  %v654_v45 = vmul.f32 %v2466_v56, %v2480_v5 }
 0x13e   : > { %v1623_v46 = vadd.f32 %v1570_v38, %v1469_v37  ;;  %v1624_v47 = vadd.f32 %v1572_v42, %v1470_v32  ;;  %v1650_v48 = vadd.f32 %v2546_v29, %v1622_v39  ;;  %v765_v49 = vunpack.c.l.bf16 %v757_v36  ;;  %v1275_v42 = vld [vmem:[#allocation2 + $0x54] sm:$0x8] }
 0x13f   : > { %v687_v51 = vrot.slane %v653_v44, 1  ;;  %v688_v52 = vrot.slane %v654_v45, 1  ;;  %v777_v59 = vmul.f32 %v2471_v57, %v2478_v4  ;;  %v778_v60 = vmul.f32 %v2471_v57, %v2480_v5 }
 0x140   : > { %v1651_v61 = vadd.f32 %v2546_v29, %v1623_v46  ;;  %v1652_v62 = vadd.f32 %v2546_v29, %v1624_v47  ;;  %v1674_v63 = vmax.f32 %v1650_v48, 0.0  ;;  %v779_v0 = vmul.f32 %v2471_v57, %v765_v49 }
 0x141   : > { %v689_v2 = vsel %vm683_vm7, %v687_v51, %v688_v52  ;;  %v735_v3 = vadd.f32 %v687_v51, %v604_v40  ;;  %v737_v6 = vadd.f32 %v688_v52, %v606_v43  ;;  %v828_v7 = vrot.slane %v777_v59, 2 }
 0x142   : > { %v1675_v9 = vmax.f32 %v1651_v61, 0.0  ;;  %v1676_v10 = vmax.f32 %v1652_v62, 0.0  ;;  %v1733_v4 = vrot.slane %v1674_v63, 7  ;;  %v736_v11 = vadd.f32 %v689_v2, %v605_v34  ;;  %v1478_v2 = vld [vmem:[#allocation2 + $0x60] sm:$0x1] }
 0x143   : > { %v829_v5 = vrot.slane %v778_v60, 2  ;;  %v831_v15 = vrot.slane %v779_v0, 2  ;;  %v890_v16 = vadd.f32 %v828_v7, %v735_v3  ;;  %v939_v17 = vunpack.c.l.bf16 %v915_v1 }
 0x144   : > { %v1734_v18 = vrot.slane %v1675_v9, 7  ;;  %v1736_v19 = vrot.slane %v1676_v10, 7  ;;  %v940_v20 = vunpack.c.l.bf16 %v916_v8  ;;  %v941_v21 = vunpack.c.h.bf16 %v916_v8 }
 0x145   : > { %v830_v22 = vsel %vm822_vm8, %v828_v7, %v829_v5  ;;  %v832_v23 = vsel %vm822_vm8, %v829_v5, %v831_v15  ;;  %v966_v24 = vmul.f32 %v2476_v35, %v939_v17  ;;  %v1126_v25 = vunpack.c.l.bf16 %v1118_v14  ;;  %v569_v17 = vld [vmem:[#allocation2 + $0x90] sm:$0x8] }
 0x146   : > { %v1735_v26 = vsel %vm1707_vm9, %v1733_v4, %v1734_v18  ;;  %v1737_v27 = vsel %vm1707_vm9, %v1734_v18, %v1736_v19  ;;  %v891_v28 = vadd.f32 %v830_v22, %v736_v11  ;;  %v892_v30 = vadd.f32 %v832_v23, %v737_v6  ;;  %v570_v22 = vld [vmem:[#allocation2 + $0x94] sm:$0xff]  }
 0x147   : > { %v1769_v32 = vpack.c.bf16 %v1737_v27, %v1735_v26  ;;  %v967_v33 = vmul.f32 %v2476_v35, %v940_v20  ;;  %v968_v34 = vmul.f32 %v2476_v35, %v941_v21  ;;  %v990_v36 = vadd.f32 %v966_v24, %v890_v16  ;;  %v762_v27 = vld [vmem:[#allocation2 + $0x9c] sm:$0x1] }
 0x148   : > { %v1015_v37 = vmul.f32 %v2489_v12, %v940_v20  ;;  %v1016_v38 = vmul.f32 %v2489_v12, %v941_v21  ;;  %v1138_v39 = vmul.f32 %v2494_v13, %v940_v20  ;;  %v1139_v40 = vmul.f32 %v2494_v13, %v941_v21 }
 0x149   : > { %2063 = vmatmul.msk.bf16.vlgmr.msra.gmra.mxu3 %vm1792_vm10, %v1769_v32  ;;  %v991_v43 = vadd.f32 %v967_v33, %v891_v28  ;;  %v992_v44 = vadd.f32 %v968_v34, %v892_v30  ;;  %v1140_v45 = vmul.f32 %v2494_v13, %v1126_v25  ;;  %v2631_v46 = vunpack.c.l.bf16 %v2132_v31 }
 0x14a   : > { %v1048_v47 = vrot.slane %v1015_v37, 1  ;;  %v1049_v48 = vrot.slane %v1016_v38, 1  ;;  %v1188_v49 = vrot.slane %v1138_v39, 2  ;;  %v1189_v51 = vrot.slane %v1139_v40, 2 }
 0x14b   : > { %v1191_v52 = vrot.slane %v1140_v45, 2  ;;  %v2633_v59 = vunpack.c.h.bf16 %v2132_v31  ;;  %v1299_v60 = vunpack.c.l.bf16 %v1275_v42  ;;  %v1327_v61 = vmul.f32 %v2517_v41, %v2631_v46 }
 0x14c   : > { %v1050_v62 = vsel %vm683_vm7, %v1048_v47, %v1049_v48  ;;  %v1096_v63 = vadd.f32 %v1048_v47, %v990_v36  ;;  %v1098_v0 = vadd.f32 %v1049_v48, %v992_v44  ;;  %v1190_v1 = vsel %vm822_vm8, %v1188_v49, %v1189_v51 }
 0x14d   : > { %v1097_v3 = vadd.f32 %v1050_v62, %v991_v43  ;;  %v1192_v6 = vsel %vm822_vm8, %v1189_v51, %v1191_v52  ;;  %v1326_v7 = vmul.f32 %v2517_v41, %v1299_v60  ;;  %v1328_v8 = vmul.f32 %v2517_v41, %v2633_v59 }
 0x14e   : > { %v1250_v9 = vadd.f32 %v1188_v49, %v1096_v63  ;;  %v1252_v10 = vadd.f32 %v1192_v6, %v1098_v0  ;;  %v1375_v4 = vmul.f32 %v2526_v50, %v2631_v46  ;;  %v1376_v11 = vmul.f32 %v2526_v50, %v2633_v59 }
 0x14f   : > { %v1251_v14 = vadd.f32 %v1190_v1, %v1097_v3  ;;  %v1486_v5 = vunpack.c.l.bf16 %v1478_v2  ;;  %v1498_v15 = vmul.f32 %v2531_v58, %v2631_v46  ;;  %v1499_v16 = vmul.f32 %v2531_v58, %v2633_v59 }
 0x150   : > { %v1350_v18 = vadd.f32 %v1326_v7, %v1250_v9  ;;  %v1352_v19 = vadd.f32 %v1328_v8, %v1252_v10  ;;  %v1408_v20 = vrot.slane %v1375_v4, 1  ;;  %v1409_v21 = vrot.slane %v1376_v11, 1  ;;  %v930_v10 = vld [vmem:[#allocation2 + $0xa4] sm:$0x8] }
 0x151   : > { %v1351_v23 = vadd.f32 %v1327_v61, %v1251_v14  ;;  %v1500_v24 = vmul.f32 %v2531_v58, %v1486_v5  ;;  %v1548_v25 = vrot.slane %v1498_v15, 2  ;;  %v1549_v26 = vrot.slane %v1499_v16, 2 }
 0x152   : > { %v1410_v28 = vsel %vm683_vm7, %v1408_v20, %v1409_v21  ;;  %v1456_v30 = vadd.f32 %v1408_v20, %v1350_v18  ;;  %v1458_v31 = vadd.f32 %v1409_v21, %v1352_v19  ;;  %v593_v32 = vunpack.c.l.bf16 %v569_v17 }
 0x153   : > { %v1457_v33 = vadd.f32 %v1410_v28, %v1351_v23  ;;  %v1550_v34 = vsel %vm822_vm8, %v1548_v25, %v1549_v26  ;;  %v1551_v36 = vrot.slane %v1500_v24, 2  ;;  %v594_v37 = vunpack.c.l.bf16 %v570_v22  ;;  %v1123_v23 = vld [vmem:[#allocation2 + $0xb0] sm:$0x1] }
 0x154   : > { %v1610_v38 = vadd.f32 %v1548_v25, %v1456_v30  ;;  %v595_v39 = vunpack.c.h.bf16 %v570_v22  ;;  %v619_v40 = vmul.f32 %v2461_v55, %v593_v32  ;;  %v770_v42 = vunpack.c.l.bf16 %v762_v27 }
 0x155   : > { %v1552_v43 = vsel %vm822_vm8, %v1549_v26, %v1551_v36  ;;  %v1611_v44 = vadd.f32 %v1550_v34, %v1457_v33  ;;  %v620_v45 = vmul.f32 %v2461_v55, %v594_v37  ;;  %v663_v47 = vmul.f32 %v2466_v56, %v594_v37  ;;  %v1290_v33 = vld [vmem:[#allocation2 + $0xb8] sm:$0x8] }
 0x156   : > { %v1612_v48 = vadd.f32 %v1552_v43, %v1458_v31  ;;  %v1638_v49 = vadd.f32 %v2546_v29, %v1610_v38  ;;  %v621_v51 = vmul.f32 %v2461_v55, %v595_v39  ;;  %v664_v52 = vmul.f32 %v2466_v56, %v595_v39 }
 0x157   : > { %v1639_v60 = vadd.f32 %v2546_v29, %v1611_v44  ;;  %v702_v61 = vrot.slane %v663_v47, 1  ;;  %v792_v62 = vmul.f32 %v2471_v57, %v594_v37  ;;  %v793_v63 = vmul.f32 %v2471_v57, %v595_v39  ;;  %v1291_v39 = vld [vmem:[#allocation2 + $0xbc] sm:$0xff]  }
 0x158   : > { %v1640_v0 = vadd.f32 %v2546_v29, %v1612_v48  ;;  %v1662_v1 = vmax.f32 %v1638_v49, 0.0  ;;  %v703_v2 = vrot.slane %v664_v52, 1  ;;  %v794_v3 = vmul.f32 %v2471_v57, %v770_v42 }
 0x159   : > { %v1663_v6 = vmax.f32 %v1639_v60, 0.0  ;;  %v750_v7 = vadd.f32 %v702_v61, %v619_v40  ;;  %v853_v8 = vrot.slane %v792_v62, 2  ;;  %v854_v9 = vrot.slane %v793_v63, 2 }
 0x15a   : > { %v1664_v4 = vmax.f32 %v1640_v0, 0.0  ;;  %v1713_v11 = vrot.slane %v1662_v1, 7  ;;  %v704_v14 = vsel %vm683_vm7, %v702_v61, %v703_v2  ;;  %v752_v5 = vadd.f32 %v703_v2, %v621_v51 }
 0x15b   : > { %v1714_v15 = vrot.slane %v1663_v6, 7  ;;  %v751_v16 = vadd.f32 %v704_v14, %v620_v45  ;;  %v855_v17 = vsel %vm822_vm8, %v853_v8, %v854_v9  ;;  %v856_v18 = vrot.slane %v794_v3, 2  ;;  %v557_v14 = vld [vmem:[#allocation2 + $0x40] sm:$0x8] }
 0x15c   : > { %v1716_v19 = vrot.slane %v1664_v4, 7  ;;  %v905_v20 = vadd.f32 %v853_v8, %v750_v7  ;;  %v954_v21 = vunpack.c.l.bf16 %v930_v10  ;;  %v982_v22 = vmul.f32 %v2476_v35, %v2576_v53  ;;  %v1483_v8 = vld [vmem:[#allocation2 + $0xc4] sm:$0x1] }
 0x15d   : > { %v1715_v24 = vsel %vm1707_vm9, %v1713_v11, %v1714_v15  ;;  %v857_v25 = vsel %vm822_vm8, %v854_v9, %v856_v18  ;;  %v906_v26 = vadd.f32 %v855_v17, %v751_v16  ;;  %v983_v27 = vmul.f32 %v2476_v35, %v2578_v54 }
 0x15e   : > { %v1717_v28 = vsel %vm1707_vm9, %v1714_v15, %v1716_v19  ;;  %v907_v30 = vadd.f32 %v857_v25, %v752_v5  ;;  %v981_v31 = vmul.f32 %v2476_v35, %v954_v21  ;;  %v1025_v32 = vmul.f32 %v2489_v12, %v2576_v53 }
 0x15f   : > { %v1765_v34 = vpack.c.bf16 %v1717_v28, %v1715_v24  ;;  %v1006_v36 = vadd.f32 %v982_v22, %v906_v26  ;;  %v1026_v37 = vmul.f32 %v2489_v12, %v2578_v54  ;;  %v1131_v38 = vunpack.c.l.bf16 %v1123_v23  ;;  %v558_v22 = vld [vmem:[#allocation2 + $0x44] sm:$0xff]  }
 0x160   : > { %v1005_v40 = vadd.f32 %v981_v31, %v905_v20  ;;  %v1007_v42 = vadd.f32 %v983_v27, %v907_v30  ;;  %v1063_v43 = vrot.slane %v1025_v32, 1  ;;  %v1153_v44 = vmul.f32 %v2494_v13, %v2576_v53 }
 0x161   : > { %2059 = vmatmul.msk.bf16.gmra.mxu1 %vm1792_vm10, %v1765_v34  ;;  %v1064_v45 = vrot.slane %v1026_v37, 1  ;;  %v1154_v47 = vmul.f32 %v2494_v13, %v2578_v54  ;;  %v1155_v48 = vmul.f32 %v2494_v13, %v1131_v38  ;;  %v1314_v49 = vunpack.c.l.bf16 %v1290_v33 }
 0x162   : > { %v1111_v51 = vadd.f32 %v1063_v43, %v1005_v40  ;;  %v1213_v52 = vrot.slane %v1153_v44, 2  ;;  %v1315_v60 = vunpack.c.l.bf16 %v1291_v39  ;;  %v1316_v61 = vunpack.c.h.bf16 %v1291_v39 }
 0x163   : > { %v1065_v62 = vsel %vm683_vm7, %v1063_v43, %v1064_v45  ;;  %v1113_v63 = vadd.f32 %v1064_v45, %v1007_v42  ;;  %v1214_v0 = vrot.slane %v1154_v47, 2  ;;  %v1216_v1 = vrot.slane %v1155_v48, 2  ;;  %v758_v42 = vld [vmem:[#allocation2 + $0x4c] sm:$0x1] }
 0x164   : > { %v1112_v2 = vadd.f32 %v1065_v62, %v1006_v36  ;;  %v1265_v3 = vadd.f32 %v1213_v52, %v1111_v51  ;;  %v1341_v6 = vmul.f32 %v2517_v41, %v1314_v49  ;;  %v1342_v7 = vmul.f32 %v2517_v41, %v1315_v60 }
 0x165   : > { %v1215_v9 = vsel %vm822_vm8, %v1213_v52, %v1214_v0  ;;  %v1217_v10 = vsel %vm822_vm8, %v1214_v0, %v1216_v1  ;;  %v1343_v4 = vmul.f32 %v2517_v41, %v1316_v61  ;;  %v1385_v11 = vmul.f32 %v2526_v50, %v1315_v60 }
 0x166   : > { %v1266_v5 = vadd.f32 %v1215_v9, %v1112_v2  ;;  %v1267_v15 = vadd.f32 %v1217_v10, %v1113_v63  ;;  %v1365_v16 = vadd.f32 %v1341_v6, %v1265_v3  ;;  %v1386_v17 = vmul.f32 %v2526_v50, %v1316_v61  ;;  %v918_v9 = vld [vmem:[#allocation2 + $0x54] sm:$0x8] }
 0x167   : > { %v1423_v18 = vrot.slane %v1385_v11, 1  ;;  %v1491_v19 = vunpack.c.l.bf16 %v1483_v8  ;;  %v1513_v20 = vmul.f32 %v2531_v58, %v1315_v60  ;;  %v1514_v21 = vmul.f32 %v2531_v58, %v1316_v61 }
 0x168   : > { %v1366_v23 = vadd.f32 %v1342_v7, %v1266_v5  ;;  %v1367_v24 = vadd.f32 %v1343_v4, %v1267_v15  ;;  %v1424_v25 = vrot.slane %v1386_v17, 1  ;;  %v581_v26 = vunpack.c.l.bf16 %v557_v14 }
 0x169   : > { %v1471_v27 = vadd.f32 %v1423_v18, %v1365_v16  ;;  %v1515_v28 = vmul.f32 %v2531_v58, %v1491_v19  ;;  %v1573_v30 = vrot.slane %v1513_v20, 2  ;;  %v1574_v31 = vrot.slane %v1514_v21, 2  ;;  %v1119_v21 = vld [vmem:[#allocation2 + $0x60] sm:$0x1] }
 0x16a   : > { %v1425_v32 = vsel %vm683_vm7, %v1423_v18, %v1424_v25  ;;  %v1473_v33 = vadd.f32 %v1424_v25, %v1367_v24  ;;  %v582_v34 = vunpack.c.l.bf16 %v558_v22  ;;  %v583_v36 = vunpack.c.h.bf16 %v558_v22 }
 0x16b   : > { %v1472_v37 = vadd.f32 %v1425_v32, %v1366_v23  ;;  %v1575_v38 = vsel %vm822_vm8, %v1573_v30, %v1574_v31  ;;  %v1576_v39 = vrot.slane %v1515_v28, 2  ;;  %v1625_v40 = vadd.f32 %v1573_v30, %v1471_v27 }
 0x16c   : > { %v607_v43 = vmul.f32 %v2461_v55, %v581_v26  ;;  %v608_v44 = vmul.f32 %v2461_v55, %v582_v34  ;;  %v609_v45 = vmul.f32 %v2461_v55, %v583_v36  ;;  %v655_v47 = vmul.f32 %v2466_v56, %v582_v34 }
 0x16d   : > { %v1577_v48 = vsel %vm822_vm8, %v1574_v31, %v1576_v39  ;;  %v1626_v49 = vadd.f32 %v1575_v38, %v1472_v37  ;;  %v1653_v51 = vadd.f32 %v2546_v29, %v1625_v40  ;;  %v656_v52 = vmul.f32 %v2466_v56, %v583_v36 }
 0x16e   : > { %v1627_v60 = vadd.f32 %v1577_v48, %v1473_v33  ;;  %v690_v61 = vrot.slane %v655_v47, 1  ;;  %v766_v62 = vunpack.c.l.bf16 %v758_v42  ;;  %v780_v63 = vmul.f32 %v2471_v57, %v582_v34  ;;  %v1278_v34 = vld [vmem:[#allocation2 + $0x68] sm:$0x8] }
 0x16f   : > { %v1654_v0 = vadd.f32 %v2546_v29, %v1626_v49  ;;  %v1677_v1 = vmax.f32 %v1653_v51, 0.0  ;;  %v691_v2 = vrot.slane %v656_v52, 1  ;;  %v781_v55 = vmul.f32 %v2471_v57, %v583_v36  ;;  %v1279_v36 = vld [vmem:[#allocation2 + $0x6c] sm:$0xff]  }
 0x170   : > { %v1655_v3 = vadd.f32 %v2546_v29, %v1627_v60  ;;  %v738_v6 = vadd.f32 %v690_v61, %v607_v43  ;;  %v782_v7 = vmul.f32 %v2471_v57, %v766_v62  ;;  %v833_v8 = vrot.slane %v780_v63, 2 }
 0x171   : > { %v1678_v10 = vmax.f32 %v1654_v0, 0.0  ;;  %v1738_v56 = vrot.slane %v1677_v1, 7  ;;  %v692_v4 = vsel %vm683_vm7, %v690_v61, %v691_v2  ;;  %v740_v11 = vadd.f32 %v691_v2, %v609_v45  ;;  %v1479_v61 = vld [vmem:[#allocation2 + $0x74] sm:$0x1] }
 0x172   : > { %v1679_v14 = vmax.f32 %v1655_v3, 0.0  ;;  %v739_v5 = vadd.f32 %v692_v4, %v608_v44  ;;  %v834_v15 = vrot.slane %v781_v55, 2  ;;  %v836_v16 = vrot.slane %v782_v7, 2 }
 0x173   : > { %v1739_v17 = vrot.slane %v1678_v10, 7  ;;  %v893_v18 = vadd.f32 %v833_v8, %v738_v6  ;;  %v942_v19 = vunpack.c.l.bf16 %v918_v9  ;;  %v970_v20 = vmul.f32 %v2476_v35, %v2631_v46  ;;  %v572_v10 = vld [vmem:[#allocation2 + $0xa4] sm:$0x8] }
 0x174   : > { %v1741_v22 = vrot.slane %v1679_v14, 7  ;;  %v835_v57 = vsel %vm822_vm8, %v833_v8, %v834_v15  ;;  %v837_v23 = vsel %vm822_vm8, %v834_v15, %v836_v16  ;;  %v971_v24 = vmul.f32 %v2476_v35, %v2633_v59 }
 0x175   : > { %v1740_v25 = vsel %vm1707_vm9, %v1738_v56, %v1739_v17  ;;  %v894_v26 = vadd.f32 %v835_v57, %v739_v5  ;;  %v895_v27 = vadd.f32 %v837_v23, %v740_v11  ;;  %v969_v28 = vmul.f32 %v2476_v35, %v942_v19 }
 0x176   : > { %v1742_v30 = vsel %vm1707_vm9, %v1739_v17, %v1741_v22  ;;  %v1017_v31 = vmul.f32 %v2489_v12, %v2631_v46  ;;  %v1018_v32 = vmul.f32 %v2489_v12, %v2633_v59  ;;  %v1127_v33 = vunpack.c.l.bf16 %v1119_v21 }
 0x177   : > { %v1770_v37 = vpack.c.bf16 %v1742_v30, %v1740_v25  ;;  %v993_v38 = vadd.f32 %v969_v28, %v893_v18  ;;  %v994_v39 = vadd.f32 %v970_v20, %v894_v26  ;;  %v995_v40 = vadd.f32 %v971_v24, %v895_v27  ;;  %v2746_v25 = vld [vmem:[%s3037_s3] ss:$0 sm:$0xff]  ;;  %v763_v27 = vld [vmem:[#allocation2 + $0xb0] sm:$0x1] }
 0x178   : > { %v1051_v42 = vrot.slane %v1017_v31, 1  ;;  %v1052_v43 = vrot.slane %v1018_v32, 1  ;;  %v1141_v35 = vmul.f32 %v2494_v13, %v2631_v46  ;;  %v1142_v44 = vmul.f32 %v2494_v13, %v2633_v59 }
 0x179   : > { %2064 = vmatmul.msk.bf16.gmra.mxu3 %vm1792_vm10, %v1770_v37  ;;  %v1143_v45 = vmul.f32 %v2494_v13, %v1127_v33  ;;  %v1302_v12 = vunpack.c.l.bf16 %v1278_v34  ;;  %v1303_v47 = vunpack.c.l.bf16 %v1279_v36  ;;  %v1304_v48 = vunpack.c.h.bf16 %v1279_v36  ;;  %v2758_v36 = vld [vmem:[%s3037_s3 + $0x1] ss:$0 sm:$0xff] }
 0x17a   : > { %v1053_v49 = vsel %vm683_vm7, %v1051_v42, %v1052_v43  ;;  %v1099_v51 = vadd.f32 %v1051_v42, %v993_v38  ;;  %v1101_v52 = vadd.f32 %v1052_v43, %v995_v40  ;;  %v1193_v60 = vrot.slane %v1141_v35, 2  ;;  %v2768_v42 = vld [vmem:[%s3037_s3 + $0x2] ss:$0 sm:$0xff] }
 0x17b   : > { %v1100_v62 = vadd.f32 %v1053_v49, %v994_v39  ;;  %v1194_v63 = vrot.slane %v1142_v44, 2  ;;  %v1196_v0 = vrot.slane %v1143_v45, 2  ;;  %v1329_v1 = vmul.f32 %v2517_v41, %v1302_v12 }
 0x17c   : > { %v1253_v2 = vadd.f32 %v1193_v60, %v1099_v51  ;;  %v1330_v55 = vmul.f32 %v2517_v41, %v1303_v47  ;;  %v1331_v3 = vmul.f32 %v2517_v41, %v1304_v48  ;;  %v1377_v13 = vmul.f32 %v2526_v50, %v1303_v47 }
 0x17d   : > { %v1195_v6 = vsel %vm822_vm8, %v1193_v60, %v1194_v63  ;;  %v1197_v7 = vsel %vm822_vm8, %v1194_v63, %v1196_v0  ;;  %v1378_v8 = vmul.f32 %v2526_v50, %v1304_v48  ;;  %v1487_v9 = vunpack.c.l.bf16 %v1479_v61  ;;  %v934_v0 = vld [vmem:[#allocation2 + $0xbc] sm:$0xff]  }
 0x17e   : > { %v1254_v56 = vadd.f32 %v1195_v6, %v1100_v62  ;;  %v1255_v4 = vadd.f32 %v1197_v7, %v1101_v52  ;;  %v1353_v11 = vadd.f32 %v1329_v1, %v1253_v2  ;;  %v1411_v14 = vrot.slane %v1377_v13, 1 }
 0x17f   : > { %v1412_v5 = vrot.slane %v1378_v8, 1  ;;  %v1501_v15 = vmul.f32 %v2531_v58, %v1303_v47  ;;  %v1502_v16 = vmul.f32 %v2531_v58, %v1304_v48  ;;  %v1503_v41 = vmul.f32 %v2531_v58, %v1487_v9 }
 0x180   : > { %v1354_v17 = vadd.f32 %v1330_v55, %v1254_v56  ;;  %v1355_v18 = vadd.f32 %v1331_v3, %v1255_v4  ;;  %v1459_v19 = vadd.f32 %v1411_v14, %v1353_v11  ;;  %v596_v20 = vunpack.c.l.bf16 %v572_v10 }
 0x181   : > { %v1413_v21 = vsel %vm683_vm7, %v1411_v14, %v1412_v5  ;;  %v1553_v50 = vrot.slane %v1501_v15, 2  ;;  %v1554_v22 = vrot.slane %v1502_v16, 2  ;;  %v1556_v57 = vrot.slane %v1503_v41, 2  ;;  %v2785_v41 = vld [vmem:[%s3037_s3 + $0x4] ss:$0 sm:$0xff] }
 0x182   : > { %v1460_v23 = vadd.f32 %v1413_v21, %v1354_v17  ;;  %v1461_v24 = vadd.f32 %v1412_v5, %v1355_v18  ;;  %v622_v26 = vmul.f32 %v2746_v25, %v596_v20  ;;  %v623_v58 = vmul.f32 %v2746_v25, %v2576_v53  ;;  %v2793_v20 = vld [vmem:[%s3037_s3 + $0x5] ss:$0 sm:$0xff] }
 0x183   : > { %v1555_v28 = vsel %vm822_vm8, %v1553_v50, %v1554_v22  ;;  %v1557_v30 = vsel %vm822_vm8, %v1554_v22, %v1556_v57  ;;  %v1613_v31 = vadd.f32 %v1553_v50, %v1459_v19  ;;  %v624_v32 = vmul.f32 %v2746_v25, %v2578_v54  ;;  %v2800_v22 = vld [vmem:[%s3037_s3 + $0x6] ss:$0 sm:$0xff] }
 0x184   : > { %v1614_v33 = vadd.f32 %v1555_v28, %v1460_v23  ;;  %v1615_v34 = vadd.f32 %v1557_v30, %v1461_v24  ;;  %v665_v37 = vmul.f32 %v2758_v36, %v2576_v53  ;;  %v666_v38 = vmul.f32 %v2758_v36, %v2578_v54  ;;  %v2135_v23 = vld [vmem:[#allocation2 + $0xd0] sm:$0xff]   ;;  %v1293_v28 = vld [vmem:[#allocation2 + $0xcc] sm:$0x8] }
 0x185   : > { %v1641_v39 = vadd.f32 %v2546_v29, %v1613_v31  ;;  %v771_v40 = vunpack.c.l.bf16 %v763_v27  ;;  %v795_v43 = vmul.f32 %v2768_v42, %v2576_v53  ;;  %v796_v35 = vmul.f32 %v2768_v42, %v2578_v54  ;;  %v933_v53 = vld [vmem:[#allocation2 + $0xb8] sm:$0x8] }
 0x186   : > { %v1642_v44 = vadd.f32 %v2546_v29, %v1614_v33  ;;  %v1643_v45 = vadd.f32 %v2546_v29, %v1615_v34  ;;  %v705_v12 = vrot.slane %v665_v37, 1  ;;  %v706_v47 = vrot.slane %v666_v38, 1  ;;  %v1124_v29 = vld [vmem:[#allocation2 + $0xc4] sm:$0x1] }
 0x187   : > { %v1665_v48 = vmax.f32 %v1641_v39, 0.0  ;;  %v797_v49 = vmul.f32 %v2768_v42, %v771_v40  ;;  %v858_v51 = vrot.slane %v795_v43, 2  ;;  %v859_v52 = vrot.slane %v796_v35, 2 }
 0x188   : > { %v1666_v60 = vmax.f32 %v1642_v44, 0.0  ;;  %v1667_v61 = vmax.f32 %v1643_v45, 0.0  ;;  %v707_v62 = vsel %vm683_vm7, %v705_v12, %v706_v47  ;;  %v753_v63 = vadd.f32 %v705_v12, %v622_v26  ;;  %v1484_v45 = vld [vmem:[#allocation2 + $0xd8] sm:$0x1] }
 0x189   : > { %v1718_v1 = vrot.slane %v1665_v48, 7  ;;  %v754_v54 = vadd.f32 %v707_v62, %v623_v58  ;;  %v755_v2 = vadd.f32 %v706_v47, %v624_v32  ;;  %v860_v55 = vsel %vm822_vm8, %v858_v51, %v859_v52 }
 0x18a   : > { %v1719_v3 = vrot.slane %v1666_v60, 7  ;;  %v1721_v13 = vrot.slane %v1667_v61, 7  ;;  %v861_v6 = vrot.slane %v797_v49, 2  ;;  %v908_v7 = vadd.f32 %v858_v51, %v753_v63  ;;  %v2812_v49 = vld [vmem:[%s3037_s3 + $0x8] ss:$0 sm:$0xff] }
 0x18b   : > { %v909_v8 = vadd.f32 %v860_v55, %v754_v54  ;;  %v957_v9 = vunpack.c.l.bf16 %v933_v53  ;;  %v958_v10 = vunpack.c.l.bf16 %v934_v0  ;;  %v959_v56 = vunpack.c.h.bf16 %v934_v0  ;;  %v2820_v53 = vld [vmem:[%s3037_s3 + $0x9] ss:$0 sm:$0xff] }
 0x18c   : > { %v1720_v4 = vsel %vm1707_vm9, %v1718_v1, %v1719_v3  ;;  %v1722_v11 = vsel %vm1707_vm9, %v1719_v3, %v1721_v13  ;;  %v862_v14 = vsel %vm822_vm8, %v859_v52, %v861_v6  ;;  %v1132_v5 = vunpack.c.l.bf16 %v1124_v29  ;;  %v2827_v3 = vld [vmem:[%s3037_s3 + $0xa] ss:$0 sm:$0xff] }
 0x18d   : > { %v1766_v15 = vpack.c.bf16 %v1722_v11, %v1720_v4  ;;  %v910_v16 = vadd.f32 %v862_v14, %v755_v2  ;;  %v984_v17 = vmul.f32 %v2785_v41, %v957_v9  ;;  %v985_v18 = vmul.f32 %v2785_v41, %v958_v10  ;;  %v560_v2 = vld [vmem:[#allocation2 + $0x54] sm:$0x8] }
 0x18e   : > { %v986_v19 = vmul.f32 %v2785_v41, %v959_v56  ;;  %v1027_v21 = vmul.f32 %v2793_v20, %v958_v10  ;;  %v1028_v50 = vmul.f32 %v2793_v20, %v959_v56  ;;  %v1156_v57 = vmul.f32 %v2800_v22, %v958_v10 }
 0x18f   : > { %2060 = vmatmul.msk.bf16.gmra.mxu1 %vm1792_vm10, %v1766_v15  ;;  %v1008_v24 = vadd.f32 %v984_v17, %v908_v7  ;;  %v1009_v26 = vadd.f32 %v985_v18, %v909_v8  ;;  %v1157_v58 = vmul.f32 %v2800_v22, %v959_v56  ;;  %v1158_v27 = vmul.f32 %v2800_v22, %v1132_v5  ;;  %v759_v18 = vld [vmem:[#allocation2 + $0x60] sm:$0x1] }
 0x190   : > { %v1010_v30 = vadd.f32 %v986_v19, %v910_v16  ;;  %v1066_v31 = vrot.slane %v1027_v21, 1  ;;  %v1067_v32 = vrot.slane %v1028_v50, 1  ;;  %v1218_v33 = vrot.slane %v1156_v57, 2 }
 0x191   : > { %v1219_v34 = vrot.slane %v1157_v58, 2  ;;  %v1221_v37 = vrot.slane %v1158_v27, 2  ;;  %v2122_v38 = vunpack.c.l.bf16 %v2135_v23  ;;  %v2123_v39 = vunpack.c.h.bf16 %v2135_v23 }
 0x192   : > { %v1068_v40 = vsel %vm683_vm7, %v1066_v31, %v1067_v32  ;;  %v1114_v43 = vadd.f32 %v1066_v31, %v1008_v24  ;;  %v1116_v35 = vadd.f32 %v1067_v32, %v1010_v30  ;;  %v1317_v44 = vunpack.c.l.bf16 %v1293_v28  ;;  %v2849_v32 = vld [vmem:[%s3038_s4] ss:$0 sm:$0xff] }
 0x193   : > { %v1115_v12 = vadd.f32 %v1068_v40, %v1009_v26  ;;  %v1220_v47 = vsel %vm822_vm8, %v1218_v33, %v1219_v34  ;;  %v1222_v48 = vsel %vm822_vm8, %v1219_v34, %v1221_v37  ;;  %v1345_v51 = vmul.f32 %v2812_v49, %v2122_v38 }
 0x194   : > { %v1268_v52 = vadd.f32 %v1218_v33, %v1114_v43  ;;  %v1270_v60 = vadd.f32 %v1222_v48, %v1116_v35  ;;  %v1344_v61 = vmul.f32 %v2812_v49, %v1317_v44  ;;  %v1346_v62 = vmul.f32 %v2812_v49, %v2123_v39  ;;  %v922_v48 = vld [vmem:[#allocation2 + $0x6c] sm:$0xff]  }
 0x195   : > { %v1269_v63 = vadd.f32 %v1220_v47, %v1115_v12  ;;  %v1387_v0 = vmul.f32 %v2820_v53, %v2122_v38  ;;  %v1388_v1 = vmul.f32 %v2820_v53, %v2123_v39  ;;  %v1492_v54 = vunpack.c.l.bf16 %v1484_v45 }
 0x196   : > { %v1368_v55 = vadd.f32 %v1344_v61, %v1268_v52  ;;  %v1370_v29 = vadd.f32 %v1346_v62, %v1270_v60  ;;  %v1516_v13 = vmul.f32 %v2827_v3, %v2122_v38  ;;  %v1517_v6 = vmul.f32 %v2827_v3, %v2123_v39 }
 0x197   : > { %v1369_v7 = vadd.f32 %v1345_v51, %v1269_v63  ;;  %v1426_v8 = vrot.slane %v1387_v0, 1  ;;  %v1427_v9 = vrot.slane %v1388_v1, 1  ;;  %v1518_v10 = vmul.f32 %v2827_v3, %v1492_v54 }
 0x198   : > { %v1578_v56 = vrot.slane %v1516_v13, 2  ;;  %v1579_v4 = vrot.slane %v1517_v6, 2  ;;  %v584_v11 = vunpack.c.l.bf16 %v560_v2  ;;  %v611_v14 = vmul.f32 %v2746_v25, %v2631_v46 }
 0x199   : > { %v1428_v5 = vsel %vm683_vm7, %v1426_v8, %v1427_v9  ;;  %v1474_v15 = vadd.f32 %v1426_v8, %v1368_v55  ;;  %v1476_v16 = vadd.f32 %v1427_v9, %v1370_v29  ;;  %v1581_v17 = vrot.slane %v1518_v10, 2  ;;  %v1120_v8 = vld [vmem:[#allocation2 + $0x74] sm:$0x1] }
 0x19a   : > { %v1475_v19 = vadd.f32 %v1428_v5, %v1369_v7  ;;  %v1580_v21 = vsel %vm822_vm8, %v1578_v56, %v1579_v4  ;;  %v610_v50 = vmul.f32 %v2746_v25, %v584_v11  ;;  %v612_v57 = vmul.f32 %v2746_v25, %v2633_v59  ;;  %v2133_v11 = vld [vmem:[#allocation2 + $0x80] sm:$0xff]  }
 0x19b   : > { %v1582_v23 = vsel %vm822_vm8, %v1579_v4, %v1581_v17  ;;  %v1628_v24 = vadd.f32 %v1578_v56, %v1474_v15  ;;  %v657_v26 = vmul.f32 %v2758_v36, %v2631_v46  ;;  %v658_v58 = vmul.f32 %v2758_v36, %v2633_v59 }
 0x19c   : > { %v1629_v27 = vadd.f32 %v1580_v21, %v1475_v19  ;;  %v1630_v28 = vadd.f32 %v1582_v23, %v1476_v16  ;;  %v767_v30 = vunpack.c.l.bf16 %v759_v18  ;;  %v783_v31 = vmul.f32 %v2768_v42, %v2631_v46  ;;  %v921_v46 = vld [vmem:[#allocation2 + $0x68] sm:$0x8] }
 0x19d   : > { %v1656_v33 = vadd.f32 %v2849_v32, %v1628_v24  ;;  %v693_v34 = vrot.slane %v657_v26, 1  ;;  %v694_v37 = vrot.slane %v658_v58, 1  ;;  %v784_v38 = vmul.f32 %v2768_v42, %v2633_v59 }
 0x19e   : > { %v1657_v39 = vadd.f32 %v2849_v32, %v1629_v27  ;;  %v1658_v40 = vadd.f32 %v2849_v32, %v1630_v28  ;;  %v785_v43 = vmul.f32 %v2768_v42, %v767_v30  ;;  %v838_v35 = vrot.slane %v783_v31, 2 }
 0x19f   : > { %v1680_v44 = vmax.f32 %v1656_v33, 0.0  ;;  %v695_v45 = vsel %vm683_vm7, %v693_v34, %v694_v37  ;;  %v741_v12 = vadd.f32 %v693_v34, %v610_v50  ;;  %v743_v47 = vadd.f32 %v694_v37, %v612_v57  ;;  %v1281_v50 = vld [vmem:[#allocation2 + $0x7c] sm:$0x8] }
 0x1a0   : > { %v1681_v51 = vmax.f32 %v1657_v39, 0.0  ;;  %v1682_v52 = vmax.f32 %v1658_v40, 0.0  ;;  %v742_v60 = vadd.f32 %v695_v45, %v611_v14  ;;  %v839_v61 = vrot.slane %v784_v38, 2  ;;  %v1480_v38 = vld [vmem:[#allocation2 + $0x88] sm:$0x1] }
 0x1a1   : > { %v1743_v62 = vrot.slane %v1680_v44, 7  ;;  %v841_v59 = vrot.slane %v785_v43, 2  ;;  %v896_v63 = vadd.f32 %v838_v35, %v741_v12  ;;  %v945_v0 = vunpack.c.l.bf16 %v921_v46 }
 0x1a2   : > { %v1744_v1 = vrot.slane %v1681_v51, 7  ;;  %v1746_v54 = vrot.slane %v1682_v52, 7  ;;  %v840_v2 = vsel %vm822_vm8, %v838_v35, %v839_v61  ;;  %v946_v55 = vunpack.c.l.bf16 %v922_v48 }
 0x1a3   : > { %v842_v29 = vsel %vm822_vm8, %v839_v61, %v841_v59  ;;  %v897_v13 = vadd.f32 %v840_v2, %v742_v60  ;;  %v947_v6 = vunpack.c.h.bf16 %v922_v48  ;;  %v972_v7 = vmul.f32 %v2785_v41, %v945_v0  ;;  %v563_v60 = vld [vmem:[#allocation2 + $0x68] sm:$0x8] }
 0x1a4   : > { %v1745_v9 = vsel %vm1707_vm9, %v1743_v62, %v1744_v1  ;;  %v1747_v10 = vsel %vm1707_vm9, %v1744_v1, %v1746_v54  ;;  %v898_v56 = vadd.f32 %v842_v29, %v743_v47  ;;  %v973_v4 = vmul.f32 %v2785_v41, %v946_v55 }
 0x1a5   : > { %v1771_v14 = vpack.c.bf16 %v1747_v10, %v1745_v9  ;;  %v974_v5 = vmul.f32 %v2785_v41, %v947_v6  ;;  %v996_v15 = vadd.f32 %v972_v7, %v896_v63  ;;  %v1019_v16 = vmul.f32 %v2793_v20, %v946_v55 }
 0x1a6   : > { %v997_v17 = vadd.f32 %v973_v4, %v897_v13  ;;  %v1020_v18 = vmul.f32 %v2793_v20, %v947_v6  ;;  %v1128_v19 = vunpack.c.l.bf16 %v1120_v8  ;;  %v1144_v21 = vmul.f32 %v2800_v22, %v946_v55  ;;  %v564_v55 = vld [vmem:[#allocation2 + $0x6c] sm:$0xff]  }
 0x1a7   : > { %2065 = vmatmul.msk.bf16.gmra.mxu3 %vm1792_vm10, %v1771_v14  ;;  %v998_v57 = vadd.f32 %v974_v5, %v898_v56  ;;  %v1054_v23 = vrot.slane %v1019_v16, 1  ;;  %v1145_v24 = vmul.f32 %v2800_v22, %v947_v6  ;;  %v2870_v26 = vunpack.c.l.bf16 %v2133_v11 }
 0x1a8   : > { %v1055_v58 = vrot.slane %v1020_v18, 1  ;;  %v1146_v27 = vmul.f32 %v2800_v22, %v1128_v19  ;;  %v1198_v28 = vrot.slane %v1144_v21, 2  ;;  %v2873_v30 = vunpack.c.h.bf16 %v2133_v11 }
 0x1a9   : > { %v1102_v31 = vadd.f32 %v1054_v23, %v996_v15  ;;  %v1199_v33 = vrot.slane %v1145_v24, 2  ;;  %v1305_v34 = vunpack.c.l.bf16 %v1281_v50  ;;  %v1333_v37 = vmul.f32 %v2812_v49, %v2870_v26  ;;  %v760_v15 = vld [vmem:[#allocation2 + $0x74] sm:$0x1] }
 0x1aa   : > { %v1056_v39 = vsel %vm683_vm7, %v1054_v23, %v1055_v58  ;;  %v1104_v40 = vadd.f32 %v1055_v58, %v998_v57  ;;  %v1201_v43 = vrot.slane %v1146_v27, 2  ;;  %v1334_v35 = vmul.f32 %v2812_v49, %v2873_v30 }
 0x1ab   : > { %v1103_v46 = vadd.f32 %v1056_v39, %v997_v17  ;;  %v1200_v44 = vsel %vm822_vm8, %v1198_v28, %v1199_v33  ;;  %v1256_v45 = vadd.f32 %v1198_v28, %v1102_v31  ;;  %v1332_v12 = vmul.f32 %v2812_v49, %v1305_v34 }
 0x1ac   : > { %v1202_v47 = vsel %vm822_vm8, %v1199_v33, %v1201_v43  ;;  %v1379_v48 = vmul.f32 %v2820_v53, %v2870_v26  ;;  %v1380_v51 = vmul.f32 %v2820_v53, %v2873_v30  ;;  %v1488_v52 = vunpack.c.l.bf16 %v1480_v38 }
 0x1ad   : > { %v1257_v61 = vadd.f32 %v1200_v44, %v1103_v46  ;;  %v1258_v62 = vadd.f32 %v1202_v47, %v1104_v40  ;;  %v1356_v59 = vadd.f32 %v1332_v12, %v1256_v45  ;;  %v1504_v63 = vmul.f32 %v2827_v3, %v2870_v26  ;;  %v924_v45 = vld [vmem:[#allocation2 + $0x7c] sm:$0x8] }
 0x1ae   : > { %v1414_v0 = vrot.slane %v1379_v48, 1  ;;  %v1415_v1 = vrot.slane %v1380_v51, 1  ;;  %v1505_v54 = vmul.f32 %v2827_v3, %v2873_v30  ;;  %v1506_v2 = vmul.f32 %v2827_v3, %v1488_v52 }
 0x1af   : > { %v1357_v29 = vadd.f32 %v1333_v37, %v1257_v61  ;;  %v1358_v13 = vadd.f32 %v1334_v35, %v1258_v62  ;;  %v1558_v6 = vrot.slane %v1504_v63, 2  ;;  %v587_v7 = vunpack.c.l.bf16 %v563_v60 }
 0x1b0   : > { %v1416_v8 = vsel %vm683_vm7, %v1414_v0, %v1415_v1  ;;  %v1462_v9 = vadd.f32 %v1414_v0, %v1356_v59  ;;  %v1559_v10 = vrot.slane %v1505_v54, 2  ;;  %v1561_v56 = vrot.slane %v1506_v2, 2  ;;  %v1121_v0 = vld [vmem:[#allocation2 + $0x88] sm:$0x1] }
 0x1b1   : > { %v1463_v4 = vadd.f32 %v1416_v8, %v1357_v29  ;;  %v1464_v11 = vadd.f32 %v1415_v1, %v1358_v13  ;;  %v588_v14 = vunpack.c.l.bf16 %v564_v55  ;;  %v589_v5 = vunpack.c.h.bf16 %v564_v55  ;;  %v1826_v29 = vpop.f32.mrf.mxu1 }
 0x1b2   : > { %v1560_v16 = vsel %vm822_vm8, %v1558_v6, %v1559_v10  ;;  %v1562_v17 = vsel %vm822_vm8, %v1559_v10, %v1561_v56  ;;  %v1616_v18 = vadd.f32 %v1558_v6, %v1462_v9  ;;  %v613_v19 = vmul.f32 %v2746_v25, %v587_v7  ;;  %v1284_v9 = vld [vmem:[#allocation2 + $0x90] sm:$0x8] }
 0x1b3   : > { %v1617_v21 = vadd.f32 %v1560_v16, %v1463_v4  ;;  %v1618_v50 = vadd.f32 %v1562_v17, %v1464_v11  ;;  %v614_v57 = vmul.f32 %v2746_v25, %v588_v14  ;;  %v615_v23 = vmul.f32 %v2746_v25, %v589_v5 }
 0x1b4   : > { %v1644_v24 = vadd.f32 %v2849_v32, %v1616_v18  ;;  %v659_v58 = vmul.f32 %v2758_v36, %v588_v14  ;;  %v660_v27 = vmul.f32 %v2758_v36, %v589_v5  ;;  %v768_v28 = vunpack.c.l.bf16 %v760_v15 }
 0x1b5   : > { %v1645_v31 = vadd.f32 %v2849_v32, %v1617_v21  ;;  %v1646_v33 = vadd.f32 %v2849_v32, %v1618_v50  ;;  %v786_v34 = vmul.f32 %v2768_v42, %v588_v14  ;;  %v787_v37 = vmul.f32 %v2768_v42, %v589_v5  ;;  %v1285_v14 = vld [vmem:[#allocation2 + $0x94] sm:$0xff]  }
 0x1b6   : > { %v1668_v38 = vmax.f32 %v1644_v24, 0.0  ;;  %v696_v39 = vrot.slane %v659_v58, 1  ;;  %v697_v40 = vrot.slane %v660_v27, 1  ;;  %v788_v25 = vmul.f32 %v2768_v42, %v768_v28 }
 0x1b7   : > { %v1669_v43 = vmax.f32 %v1645_v31, 0.0  ;;  %v1670_v35 = vmax.f32 %v1646_v33, 0.0  ;;  %v843_v46 = vrot.slane %v786_v34, 2  ;;  %v844_v44 = vrot.slane %v787_v37, 2  ;;  %v1481_v34 = vld [vmem:[#allocation2 + $0x9c] sm:$0x1] }
 0x1b8   : > { %v1723_v36 = vrot.slane %v1668_v38, 7  ;;  %v698_v12 = vsel %vm683_vm7, %v696_v39, %v697_v40  ;;  %v744_v47 = vadd.f32 %v696_v39, %v613_v19  ;;  %v746_v48 = vadd.f32 %v697_v40, %v615_v23 }
 0x1b9   : > { %v1724_v51 = vrot.slane %v1669_v43, 7  ;;  %v1726_v52 = vrot.slane %v1670_v35, 7  ;;  %v745_v60 = vadd.f32 %v698_v12, %v614_v57  ;;  %v845_v61 = vsel %vm822_vm8, %v843_v46, %v844_v44 }
 0x1ba   : > { %v846_v62 = vrot.slane %v788_v25, 2  ;;  %v899_v59 = vadd.f32 %v843_v46, %v744_v47  ;;  %v948_v63 = vunpack.c.l.bf16 %v924_v45  ;;  %v976_v42 = vmul.f32 %v2785_v41, %v2870_v26  ;;  %v1868_v47 = vld [vmem:[%s2936_s24] sm:$0xff] }
 0x1bb   : > { %v1725_v1 = vsel %vm1707_vm9, %v1723_v36, %v1724_v51  ;;  %v1727_v54 = vsel %vm1707_vm9, %v1724_v51, %v1726_v52  ;;  %v900_v2 = vadd.f32 %v845_v61, %v745_v60  ;;  %v977_v55 = vmul.f32 %v2785_v41, %v2873_v30 }
 0x1bc   : > { %v1767_v13 = vpack.c.bf16 %v1727_v54, %v1725_v1  ;;  %v847_v6 = vsel %vm822_vm8, %v844_v44, %v846_v62  ;;  %v975_v7 = vmul.f32 %v2785_v41, %v948_v63  ;;  %v1021_v8 = vmul.f32 %v2793_v20, %v2870_v26 }
 0x1bd   : > { %v901_v10 = vadd.f32 %v847_v6, %v746_v48  ;;  %v1000_v56 = vadd.f32 %v976_v42, %v900_v2  ;;  %v1022_v4 = vmul.f32 %v2793_v20, %v2873_v30  ;;  %v1129_v11 = vunpack.c.l.bf16 %v1121_v0  ;;  %v1828_v48 = vpop.f32.mrf.mxu1 }
 0x1be   : > { %2061 = vmatmul.msk.bf16.gmra.mxu1 %vm1792_vm10, %v1767_v13  ;;  %v999_v5 = vadd.f32 %v975_v7, %v899_v59  ;;  %v1057_v15 = vrot.slane %v1021_v8, 1  ;;  %v1147_v16 = vmul.f32 %v2800_v22, %v2870_v26  ;;  %v1148_v41 = vmul.f32 %v2800_v22, %v2873_v30 }
 0x1bf   : > { %v1001_v17 = vadd.f32 %v977_v55, %v901_v10  ;;  %v1058_v18 = vrot.slane %v1022_v4, 1  ;;  %v1149_v19 = vmul.f32 %v2800_v22, %v1129_v11  ;;  %v1308_v21 = vunpack.c.l.bf16 %v1284_v9  ;;  %v2933_v22 = vld [vmem:[%s3040_s6] ss:$0 sm:$0xff] }
 0x1c0   : > { %v1105_v20 = vadd.f32 %v1057_v15, %v999_v5  ;;  %v1203_v50 = vrot.slane %v1147_v16, 2  ;;  %v1204_v57 = vrot.slane %v1148_v41, 2  ;;  %v1309_v23 = vunpack.c.l.bf16 %v1285_v14 }
 0x1c1   : > { %v1059_v24 = vsel %vm683_vm7, %v1057_v15, %v1058_v18  ;;  %v1107_v58 = vadd.f32 %v1058_v18, %v1001_v17  ;;  %v1206_v27 = vrot.slane %v1149_v19, 2  ;;  %v1310_v28 = vunpack.c.h.bf16 %v1285_v14 }
 0x1c2   : > { %v1106_v26 = vadd.f32 %v1059_v24, %v1000_v56  ;;  %v1205_v31 = vsel %vm822_vm8, %v1203_v50, %v1204_v57  ;;  %v1259_v30 = vadd.f32 %v1203_v50, %v1105_v20  ;;  %v1335_v33 = vmul.f32 %v2812_v49, %v1308_v21  ;;  %v1878_v56 = vld [vmem:[%s2936_s24 + $0x50] sm:$0xff] }
 0x1c3   : > { %v1207_v37 = vsel %vm822_vm8, %v1204_v57, %v1206_v27  ;;  %v1336_v38 = vmul.f32 %v2812_v49, %v1309_v23  ;;  %v1337_v39 = vmul.f32 %v2812_v49, %v1310_v28  ;;  %v1381_v40 = vmul.f32 %v2820_v53, %v1309_v23  ;;  %v1879_v57 = vld [vmem:[%s2936_s24 + $0x58] sm:$0xff]  ;;  %v1870_v27 = vld [vmem:[%s2936_s24 + $0x10] sm:$0xff] }
 0x1c4   : > { %v1260_v25 = vadd.f32 %v1205_v31, %v1106_v26  ;;  %v1261_v43 = vadd.f32 %v1207_v37, %v1107_v58  ;;  %v1359_v35 = vadd.f32 %v1335_v33, %v1259_v30  ;;  %v1382_v46 = vmul.f32 %v2820_v53, %v1310_v28  ;;  %v1869_v53 = vld [vmem:[%s2936_s24 + $0x8] sm:$0xff]  ;;  %v1871_v30 = vld [vmem:[%s2936_s24 + $0x18] sm:$0xff] }
 0x1c5   : > { %v1417_v44 = vrot.slane %v1381_v40, 1  ;;  %v1489_v45 = vunpack.c.l.bf16 %v1481_v34  ;;  %v1507_v36 = vmul.f32 %v2827_v3, %v1309_v23  ;;  %v1508_v12 = vmul.f32 %v2827_v3, %v1310_v28 }
 0x1c6   : > { %v1360_v51 = vadd.f32 %v1336_v38, %v1260_v25  ;;  %v1361_v52 = vadd.f32 %v1337_v39, %v1261_v43  ;;  %v1418_v49 = vrot.slane %v1382_v46, 1  ;;  %v1827_v60 = vadd.f32 %v2933_v22, %v1826_v29  ;;  %v1880_v38 = vld [vmem:[%s2936_s24 + $0x60] sm:$0xff]  ;;  %v1881_v43 = vld [vmem:[%s2936_s24 + $0x68] sm:$0xff] }
 0x1c7   : > { %v1465_v61 = vadd.f32 %v1417_v44, %v1359_v35  ;;  %v1509_v62 = vmul.f32 %v2827_v3, %v1489_v45  ;;  %v1563_v59 = vrot.slane %v1507_v36, 2  ;;  %v1564_v63 = vrot.slane %v1508_v12, 2  ;;  %v1872_v45 = vld [vmem:[%s2936_s24 + $0x20] sm:$0xff] }
 0x1c8   : > { %v1419_v42 = vsel %vm683_vm7, %v1417_v44, %v1418_v49  ;;  %v1467_v0 = vadd.f32 %v1418_v49, %v1361_v52  ;;  %v1884_v1 = vadd.f32 %v1868_v47, %v1827_v60  ;;  %v1829_v54 = vadd.f32 %v2933_v22, %v1828_v48  ;;  %v1873_v48 = vld [vmem:[%s2936_s24 + $0x28] sm:$0xff]  ;;  %v1882_v60 = vld [vmem:[%s2936_s24 + $0x70] sm:$0xff] }
 0x1c9   : > { %v1466_v2 = vadd.f32 %v1419_v42, %v1360_v51  ;;  %v1566_v55 = vrot.slane %v1509_v62, 2  ;;  %v1619_v13 = vadd.f32 %v1563_v59, %v1465_v61  ;;  %v1565_v6 = vsel %vm822_vm8, %v1563_v59, %v1564_v63 }
 0x1ca   : > { %1900 = vst.msk [vmem:[%s2334_s20] sm:$0xff] %vm391_vm5, %v1884_v1  ;;  %v1885_v29 = vadd.f32 %v1869_v53, %v1829_v54  ;;  %v1874_v1 = vld [vmem:[%s2936_s24 + $0x30] sm:$0xff] }
 0x1cb   : > { %v1567_v3 = vsel %vm822_vm8, %v1564_v63, %v1566_v55  ;;  %v1620_v7 = vadd.f32 %v1565_v6, %v1466_v2  ;;  %v1647_v8 = vadd.f32 %v2849_v32, %v1619_v13  ;;  %v1883_v63 = vld [vmem:[%s2936_s24 + $0x78] sm:$0xff] }
 0x1cc   : > { %v1621_v9 = vadd.f32 %v1567_v3, %v1467_v0  ;;  %v1851_v10 = vpop.f32.mrf.mxu3  ;;  %1901 = vst.msk [vmem:[%s2334_s20 + $0x8] sm:$0xff] %vm391_vm5, %v1885_v29  ;;  %v1875_v13 = vld [vmem:[%s2936_s24 + $0x38] sm:$0xff] }
 0x1cd   : > { %v1648_v4 = vadd.f32 %v2849_v32, %v1620_v7  ;;  %v1671_v11 = vmax.f32 %v1647_v8, 0.0  ;;  %v1852_v14 = vadd.f32 %v2933_v22, %v1851_v10  ;;  %v1876_v7 = vld [vmem:[%s2936_s24 + $0x40] sm:$0xff] }
 0x1ce   : > { %v1649_v5 = vadd.f32 %v2849_v32, %v1621_v9 }
 0x1cf   : > { %v1672_v15 = vmax.f32 %v1648_v4, 0.0  ;;  %v1728_v16 = vrot.slane %v1671_v11, 7  ;;  %v1894_v41 = vadd.f32 %v1878_v56, %v1852_v14  ;;  %v1877_v56 = vld [vmem:[%s2936_s24 + $0x48] sm:$0xff] }
 0x1d0   : > { %v1673_v17 = vmax.f32 %v1649_v5, 0.0 }
 0x1d1   : > { %v1729_v18 = vrot.slane %v1672_v15, 7  ;;  %1910 = vst.msk [vmem:[%s2334_s20 + $0x50] sm:$0xff] %vm391_vm5, %v1894_v41 }
 0x1d2   : > { %v1731_v19 = vrot.slane %v1673_v17, 7 }
 0x1d3   : > { %v1730_v21 = vsel %vm1707_vm9, %v1728_v16, %v1729_v18 }
 0x1d4   : > { %v1732_v20 = vsel %vm1707_vm9, %v1729_v18, %v1731_v19  ;;  %v1853_v50 = vpop.f32.mrf.mxu3 }
 0x1d5   : > { %v1768_v32 = vpack.c.bf16 %v1732_v20, %v1730_v21  ;;  %v1854_v23 = vadd.f32 %v2933_v22, %v1853_v50 }
 0x1d7   : > { %2062 = vmatmul.msk.bf16.gmra.mxu1 %vm1792_vm10, %v1768_v32  ;;  %v1895_v24 = vadd.f32 %v1879_v57, %v1854_v23 }
 0x1d9   : > { %1911 = vst.msk [vmem:[%s2334_s20 + $0x58] sm:$0xff] %vm391_vm5, %v1895_v24 }
 0x1de   : > { %v1831_v58 = vpop.f32.mrf.mxu1 }
 0x1df   : > { %v1832_v28 = vadd.f32 %v2933_v22, %v1831_v58 }
 0x1e1   : > { %v1886_v26 = vadd.f32 %v1870_v27, %v1832_v28 }
 0x1e3   : > { %1902 = vst.msk [vmem:[%s2334_s20 + $0x10] sm:$0xff] %vm391_vm5, %v1886_v26 }
 0x1e6   : > { %v1833_v31 = vpop.f32.mrf.mxu1 }
 0x1e7   : > { %v1834_v33 = vadd.f32 %v2933_v22, %v1833_v31 }
 0x1e9   : > { %v1887_v34 = vadd.f32 %v1871_v30, %v1834_v33 }
 0x1eb   : > { %1903 = vst.msk [vmem:[%s2334_s20 + $0x18] sm:$0xff] %vm391_vm5, %v1887_v34 }
 0x1fc   : > { %v1856_v37 = vpop.f32.mrf.mxu3 }
 0x1fd   : > { %v1857_v39 = vadd.f32 %v2933_v22, %v1856_v37 }
 0x1ff   : > { %v1896_v40 = vadd.f32 %v1880_v38, %v1857_v39 }
 0x201   : > { %1912 = vst.msk [vmem:[%s2334_s20 + $0x60] sm:$0xff] %vm391_vm5, %v1896_v40 }
 0x204   : > { %v1858_v25 = vpop.f32.mrf.mxu3 }
 0x205   : > { %v1859_v35 = vadd.f32 %v2933_v22, %v1858_v25 }
 0x207   : > { %v1897_v46 = vadd.f32 %v1881_v43, %v1859_v35 }
 0x209   : > { %1913 = vst.msk [vmem:[%s2334_s20 + $0x68] sm:$0xff] %vm391_vm5, %v1897_v46 }
 0x20c   : > { %v1836_v44 = vpop.f32.mrf.mxu1 }
 0x20d   : > { %v1837_v36 = vadd.f32 %v2933_v22, %v1836_v44 }
 0x20f   : > { %v1888_v12 = vadd.f32 %v1872_v45, %v1837_v36 }
 0x211   : > { %1904 = vst.msk [vmem:[%s2334_s20 + $0x20] sm:$0xff] %vm391_vm5, %v1888_v12 }
 0x214   : > { %v1838_v47 = vpop.f32.mrf.mxu1 }
 0x215   : > { %v1839_v51 = vadd.f32 %v2933_v22, %v1838_v47 }
 0x217   : > { %v1889_v52 = vadd.f32 %v1873_v48, %v1839_v51 }
 0x219   : > { %1905 = vst.msk [vmem:[%s2334_s20 + $0x28] sm:$0xff] %vm391_vm5, %v1889_v52 }
 0x22a   : > { %v1861_v49 = vpop.f32.mrf.mxu3 }
 0x22b   : > { %v1862_v61 = vadd.f32 %v2933_v22, %v1861_v49 }
 0x22d   : > { %v1898_v62 = vadd.f32 %v1882_v60, %v1862_v61 }
 0x22f   : > { %1914 = vst.msk [vmem:[%s2334_s20 + $0x70] sm:$0xff] %vm391_vm5, %v1898_v62 }
 0x232   : > { %v1863_v59 = vpop.f32.mrf.mxu3 }
 0x233   : > { %v1864_v53 = vadd.f32 %v2933_v22, %v1863_v59 }
 0x235   : > { %v1899_v42 = vadd.f32 %v1883_v63, %v1864_v53 }
 0x237   : > { %1915 = vst.msk [vmem:[%s2334_s20 + $0x78] sm:$0xff] %vm391_vm5, %v1899_v42 }
 0x23b   : > { %v1841_v0 = vpop.f32.mrf.mxu1 }
 0x23c   : > { %v1842_v54 = vadd.f32 %v2933_v22, %v1841_v0 }
 0x23e   : > { %v1890_v2 = vadd.f32 %v1874_v1, %v1842_v54 }
 0x240   : > { %1906 = vst.msk [vmem:[%s2334_s20 + $0x30] sm:$0xff] %vm391_vm5, %v1890_v2 }
 0x243   : > { %v1843_v55 = vpop.f32.mrf.mxu1 }
 0x244   : > { %v1844_v6 = vadd.f32 %v2933_v22, %v1843_v55 }
 0x246   : > { %v1891_v29 = vadd.f32 %v1875_v13, %v1844_v6 }
 0x248   : > { %1907 = vst.msk [vmem:[%s2334_s20 + $0x38] sm:$0xff] %vm391_vm5, %v1891_v29 }
 0x254   : > { %v1846_v3 = vpop.f32.mrf.mxu1 }
 0x255   : > { %v1847_v8 = vadd.f32 %v2933_v22, %v1846_v3 }
 0x257   : > { %v1892_v9 = vadd.f32 %v1876_v7, %v1847_v8 }
 0x259   : > { %1908 = vst.msk [vmem:[%s2334_s20 + $0x40] sm:$0xff] %vm391_vm5, %v1892_v9 }
 0x25c   : > { %v1848_v10 = vpop.f32.mrf.mxu1 }
 0x25d   : > { %v1849_v4 = vadd.f32 %v2933_v22, %v1848_v10 }
 0x25f   : > { %v1893_v11 = vadd.f32 %v1877_v56, %v1849_v4 }
 0x261   : > { %1909 = vst.msk [vmem:[%s2334_s20 + $0x48] sm:$0xff] %vm391_vm5, %v1893_v11 }
 0x262 PF: > { %s17_s28 = sadd.s32 1, %s2242_s28   ;;  %s3042_s24 = smov %s2234_s26 }
 0x263   : > { %p14_p11 = scmp.ge.s32.totalorder %s17_s28, 6   ;;  %s3043_s25 = smov %s2238_s27 }
 0x264   : > { %s3044_s26 = smov %s3047_s29  ;;  %s3045_s27 = smov %s3051_s30 }
 0x265   :  { %16 = sbr.rel (!%p14_p11) target bundleno = 3 (0x3), region = 96 }

</bundles_post_ra>
